<compile_context>
chip_gen: v7x
topology: tpu7x:2x2x1
jax: 0.10.0
libtpu: 0.0.40
codegen_flags: <defaults>
</compile_context>

<pallas_src>
import jax
import jax.numpy as jnp
from jax.experimental import pallas as pl
from jax.experimental.pallas import tpu as pltpu

# ---------------- configuration (small synthetic CLIP text transformer) -------------
BATCH = 2          # number of prompts
SEQ = 8            # context length
D_MODEL = 64       # transformer width
N_HEADS = 4
HEAD_DIM = D_MODEL // N_HEADS
N_LAYERS = 2
EMBED = 32         # text_projection output dim
LN_EPS = 1e-5
NEG_INF = -1e9     # causal-mask fill value
TOKENS = BATCH * SEQ


def _layernorm(x, g, b):
    mu = jnp.mean(x, axis=-1, keepdims=True)
    var = jnp.mean(jnp.square(x - mu), axis=-1, keepdims=True)
    return (x - mu) * jax.lax.rsqrt(var + LN_EPS) * g + b


# ---------------------------------- fused kernel ------------------------------------
def _text_encoder_kernel(x0_ref, pos_ref, mask_ref, onehot_ref,
                         ln1_g_ref, ln1_b_ref,
                         wq_ref, wk_ref, wv_ref, bq_ref, bk_ref, bv_ref,
                         wo_ref, bo_ref,
                         ln2_g_ref, ln2_b_ref, w1_ref, b1_ref, w2_ref, b2_ref,
                         lnf_g_ref, lnf_b_ref, proj_ref,
                         out_ref):
    """Entire TextEncoder forward; activations are (BATCH*SEQ, D_MODEL) throughout."""
    scale = 1.0 / (HEAD_DIM ** 0.5)
    mask = mask_ref[...]                                              # (T, T) block-diag causal
    x = x0_ref[...].astype(jnp.float32) + pos_ref[...].astype(jnp.float32)

    for layer in range(N_LAYERS):                                     # unrolled
        # ---- attention branch: x + attn(ln_1(x)) ----
        h = _layernorm(x, ln1_g_ref[layer], ln1_b_ref[layer])
        q = jnp.dot(h, wq_ref[layer], preferred_element_type=jnp.float32) + bq_ref[layer]
        k = jnp.dot(h, wk_ref[layer], preferred_element_type=jnp.float32) + bk_ref[layer]
        v = jnp.dot(h, wv_ref[layer], preferred_element_type=jnp.float32) + bv_ref[layer]
        wo = wo_ref[layer]                                            # (D, D)

        attn = jnp.zeros((TOKENS, D_MODEL), jnp.float32)
        for hi in range(N_HEADS):                                     # unrolled
            c0 = hi * HEAD_DIM
            qh = q[:, c0:c0 + HEAD_DIM]                               # (T, HD)
            kh = k[:, c0:c0 + HEAD_DIM]
            vh = v[:, c0:c0 + HEAD_DIM]
            # scores over the flattened token axis; cross-batch entries are masked
            # to -1e9 so exp() underflows to exactly 0 -> no cross-prompt leakage.
            s = jax.lax.dot_general(qh, kh, (((1,), (1,)), ((), ())),
                                    preferred_element_type=jnp.float32) * scale + mask
            s = s - jnp.max(s, axis=-1, keepdims=True)
            p = jnp.exp(s)
            p = p / jnp.sum(p, axis=-1, keepdims=True)
            oh = jnp.dot(p, vh, preferred_element_type=jnp.float32)   # (T, HD)
            # fold head output straight into the output projection rows for this head
            attn = attn + jnp.dot(oh, wo[c0:c0 + HEAD_DIM, :],
                                  preferred_element_type=jnp.float32)  # (T, D)
        x = x + attn + bo_ref[layer]

        # ---- MLP branch: x + mlp(ln_2(x)) with QuickGELU (CLIP) ----
        h2 = _layernorm(x, ln2_g_ref[layer], ln2_b_ref[layer])
        m = jnp.dot(h2, w1_ref[layer], preferred_element_type=jnp.float32) + b1_ref[layer]
        m = m * jax.nn.sigmoid(1.702 * m)
        x = x + jnp.dot(m, w2_ref[layer], preferred_element_type=jnp.float32) + b2_ref[layer]

    # ---- head: EOT-token gather via one-hot matmul, ln_final, text projection ----
    x_eot = jnp.dot(onehot_ref[...], x, preferred_element_type=jnp.float32)   # (N, D)
    x_eot = _layernorm(x_eot, lnf_g_ref[...], lnf_b_ref[...])
    out_ref[...] = jnp.dot(x_eot, proj_ref[...],
                           preferred_element_type=jnp.float32).astype(out_ref.dtype)


# --------------------------------- wrapper -------------------------------------------
def text_encoder_forward(prompts, tokenized_prompts, params):
    """Equivalent of TextEncoder.forward(prompts, tokenized_prompts)."""
    n, l, d = prompts.shape
    blocks = params['blocks']

    # ---- host-side glue: flatten, tile pos, build masks / one-hot, stack weights ----
    x0 = prompts.reshape(n * l, d)
    pos = jnp.tile(params['pos'], (n, 1))                              # (N*L, D)

    # block-diagonal causal mask on the flattened token axis
    r = jnp.arange(n * l)[:, None]
    c = jnp.arange(n * l)[None, :]
    mask = jnp.where((r // l == c // l) & (c <= r), 0.0, NEG_INF).astype(jnp.float32)

    # EOT-token selector: one-hot over the flattened token axis (argmax is JAX glue)
    eot = jnp.argmax(tokenized_prompts, axis=-1)
    onehot = jax.nn.one_hot(jnp.arange(n) * l + eot, n * l, dtype=jnp.float32)

    def stack(fn):
        return jnp.stack([fn(bp) for bp in blocks], axis=0)

    ln1_g = stack(lambda bp: bp['ln1_g'])
    ln1_b = stack(lambda bp: bp['ln1_b'])
    wq = stack(lambda bp: bp['wqkv'][:, :d])                           # lane-aligned slabs
    wk = stack(lambda bp: bp['wqkv'][:, d:2 * d])
    wv = stack(lambda bp: bp['wqkv'][:, 2 * d:])
    bq = stack(lambda bp: bp['bqkv'][:, :d])
    bk = stack(lambda bp: bp['bqkv'][:, d:2 * d])
    bv = stack(lambda bp: bp['bqkv'][:, 2 * d:])
    wo = stack(lambda bp: bp['wo'])
    bo = stack(lambda bp: bp['bo'])
    ln2_g = stack(lambda bp: bp['ln2_g'])
    ln2_b = stack(lambda bp: bp['ln2_b'])
    w1 = stack(lambda bp: bp['w1'])
    b1 = stack(lambda bp: bp['b1'])
    w2 = stack(lambda bp: bp['w2'])
    b2 = stack(lambda bp: bp['b2'])

    out = pl.pallas_call(
        _text_encoder_kernel,
        out_shape=jax.ShapeDtypeStruct((n, params['proj'].shape[-1]), prompts.dtype),
    )(x0, pos, mask, onehot,
      ln1_g, ln1_b, wq, wk, wv, bq, bk, bv, wo, bo,
      ln2_g, ln2_b, w1, b1, w2, b2,
      params['lnf_g'], params['lnf_b'], params['proj'])
    return out


# ------------------------------ reference (pure JAX) ---------------------------------
def reference_forward(prompts, tokenized_prompts, params):
    x = prompts + params['pos']
    n, l, d = x.shape
    row = jnp.arange(l)[:, None]
    col = jnp.arange(l)[None, :]
    mask = jnp.where(col > row, NEG_INF, 0.0).astype(jnp.float32)
    for bp in params['blocks']:
        h = _layernorm(x, bp['ln1_g'], bp['ln1_b'])
        qkv = h @ bp['wqkv'] + bp['bqkv']
        q, k, v = jnp.split(qkv, 3, axis=-1)
        qh = q.reshape(n, l, N_HEADS, HEAD_DIM).transpose(0, 2, 1, 3)
        kh = k.reshape(n, l, N_HEADS, HEAD_DIM).transpose(0, 2, 1, 3)
        vh = v.reshape(n, l, N_HEADS, HEAD_DIM).transpose(0, 2, 1, 3)
        s = jnp.einsum('nhqd,nhkd->nhqk', qh, kh) / (HEAD_DIM ** 0.5) + mask
        p = jax.nn.softmax(s, axis=-1)
        o = jnp.einsum('nhqk,nhkd->nhqd', p, vh).transpose(0, 2, 1, 3).reshape(n, l, d)
        x = x + (o @ bp['wo'] + bp['bo'])
        h2 = _layernorm(x, bp['ln2_g'], bp['ln2_b'])
        m = h2 @ bp['w1'] + bp['b1']
        m = m * jax.nn.sigmoid(1.702 * m)
        x = x + (m @ bp['w2'] + bp['b2'])
    x = _layernorm(x, params['lnf_g'], params['lnf_b'])
    eot = jnp.argmax(tokenized_prompts, axis=-1)
    return x[jnp.arange(n), eot] @ params['proj']


# ------------------------------- parameter init --------------------------------------
def init_params(key):
    ks = jax.random.split(key, 2 + 8 * N_LAYERS)
    p = {
        'pos': 0.01 * jax.random.normal(ks[0], (SEQ, D_MODEL), jnp.float32),
        'lnf_g': jnp.ones((1, D_MODEL), jnp.float32),
        'lnf_b': jnp.zeros((1, D_MODEL), jnp.float32),
        'proj': (D_MODEL ** -0.5) * jax.random.normal(ks[1], (D_MODEL, EMBED), jnp.float32),
    }
    blocks = []
    for i in range(N_LAYERS):
        kk = ks[2 + 8 * i: 2 + 8 * (i + 1)]
        blocks.append(dict(
            ln1_g=jnp.ones((1, D_MODEL), jnp.float32),
            ln1_b=jnp.zeros((1, D_MODEL), jnp.float32),
            wqkv=(D_MODEL ** -0.5) * jax.random.normal(kk[0], (D_MODEL, 3 * D_MODEL), jnp.float32),
            bqkv=0.01 * jax.random.normal(kk[1], (1, 3 * D_MODEL), jnp.float32),
            wo=(D_MODEL ** -0.5) * jax.random.normal(kk[2], (D_MODEL, D_MODEL), jnp.float32),
            bo=0.01 * jax.random.normal(kk[3], (1, D_MODEL), jnp.float32),
            ln2_g=jnp.ones((1, D_MODEL), jnp.float32),
            ln2_b=jnp.zeros((1, D_MODEL), jnp.float32),
            w1=(D_MODEL ** -0.5) * jax.random.normal(kk[4], (D_MODEL, 4 * D_MODEL), jnp.float32),
            b1=0.01 * jax.random.normal(kk[5], (1, 4 * D_MODEL), jnp.float32),
            w2=((4 * D_MODEL) ** -0.5) * jax.random.normal(kk[6], (4 * D_MODEL, D_MODEL), jnp.float32),
            b2=0.01 * jax.random.normal(kk[7], (1, D_MODEL), jnp.float32),
        ))
    p['blocks'] = blocks
    return p


# ------------------------------------- main -------------------------------------------
if __name__ == "__main__":
    key = jax.random.PRNGKey(0)
    kp, kx, kt = jax.random.split(key, 3)
    params = init_params(kp)

    prompts = jax.random.normal(kx, (BATCH, SEQ, D_MODEL), jnp.float32)   # learned prompt embeddings
    tokenized_prompts = jax.random.randint(kt, (BATCH, SEQ), 0, 1000, dtype=jnp.int32)

    fwd = jax.jit(text_encoder_forward)
    out = jax.block_until_ready(fwd(prompts, tokenized_prompts, params))

    ref = reference_forward(prompts, tokenized_prompts, params)
    assert out.shape == (BATCH, EMBED), out.shape
    max_err = float(jnp.max(jnp.abs(out - ref)))
    assert jnp.allclose(out, ref, atol=1e-3, rtol=1e-3), f"max_err={max_err}"
    print("KERNEL_OK")
</pallas_src>

<mosaic_0001>
module attributes {stable_mosaic.version = 11 : i64} {
  func.func @_text_encoder_kernel(%arg0: memref<16x64xf32, #tpu.memory_space<vmem>>, %arg1: memref<16x64xf32, #tpu.memory_space<vmem>>, %arg2: memref<16x16xf32, #tpu.memory_space<vmem>>, %arg3: memref<2x16xf32, #tpu.memory_space<vmem>>, %arg4: memref<2x1x64xf32, #tpu.memory_space<vmem>>, %arg5: memref<2x1x64xf32, #tpu.memory_space<vmem>>, %arg6: memref<2x64x64xf32, #tpu.memory_space<vmem>>, %arg7: memref<2x64x64xf32, #tpu.memory_space<vmem>>, %arg8: memref<2x64x64xf32, #tpu.memory_space<vmem>>, %arg9: memref<2x1x64xf32, #tpu.memory_space<vmem>>, %arg10: memref<2x1x64xf32, #tpu.memory_space<vmem>>, %arg11: memref<2x1x64xf32, #tpu.memory_space<vmem>>, %arg12: memref<2x64x64xf32, #tpu.memory_space<vmem>>, %arg13: memref<2x1x64xf32, #tpu.memory_space<vmem>>, %arg14: memref<2x1x64xf32, #tpu.memory_space<vmem>>, %arg15: memref<2x1x64xf32, #tpu.memory_space<vmem>>, %arg16: memref<2x64x256xf32, #tpu.memory_space<vmem>>, %arg17: memref<2x1x256xf32, #tpu.memory_space<vmem>>, %arg18: memref<2x256x64xf32, #tpu.memory_space<vmem>>, %arg19: memref<2x1x64xf32, #tpu.memory_space<vmem>>, %arg20: memref<1x64xf32, #tpu.memory_space<vmem>>, %arg21: memref<1x64xf32, #tpu.memory_space<vmem>>, %arg22: memref<64x32xf32, #tpu.memory_space<vmem>>, %arg23: memref<2x32xf32, #tpu.memory_space<vmem>>) attributes {dimension_semantics = [], scalar_prefetch = 0 : i64, scratch_operands = 0 : i64, tpu.core_type = #tpu.core_type<tc>} {
    %c0 = arith.constant 0 : index
    %c0_0 = arith.constant 0 : index
    %0 = vector.load %arg2[%c0, %c0_0] : memref<16x16xf32, #tpu.memory_space<vmem>>, vector<16x16xf32>
    %c0_1 = arith.constant 0 : index
    %c0_2 = arith.constant 0 : index
    %1 = vector.load %arg0[%c0_1, %c0_2] : memref<16x64xf32, #tpu.memory_space<vmem>>, vector<16x64xf32>
    %c0_3 = arith.constant 0 : index
    %c0_4 = arith.constant 0 : index
    %2 = vector.load %arg1[%c0_3, %c0_4] : memref<16x64xf32, #tpu.memory_space<vmem>>, vector<16x64xf32>
    %3 = arith.addf %1, %2 : vector<16x64xf32>
    %c0_5 = arith.constant 0 : index
    %c0_6 = arith.constant 0 : index
    %c0_7 = arith.constant 0 : index
    %4 = vector.load %arg4[%c0_5, %c0_6, %c0_7] : memref<2x1x64xf32, #tpu.memory_space<vmem>>, vector<1x1x64xf32>
    %5 = vector.shape_cast %4 : vector<1x1x64xf32> to vector<1x64xf32>
    %c0_8 = arith.constant 0 : index
    %c0_9 = arith.constant 0 : index
    %c0_10 = arith.constant 0 : index
    %6 = vector.load %arg5[%c0_8, %c0_9, %c0_10] : memref<2x1x64xf32, #tpu.memory_space<vmem>>, vector<1x1x64xf32>
    %7 = vector.shape_cast %6 : vector<1x1x64xf32> to vector<1x64xf32>
    %cst = arith.constant dense<0.000000e+00> : vector<16xf32>
    %8 = vector.multi_reduction <add>, %3, %cst [1] : vector<16x64xf32> to vector<16xf32>
    %9 = vector.shape_cast %8 : vector<16xf32> to vector<16x1xf32>
    %cst_11 = arith.constant 6.400000e+01 : f32
    %10 = vector.broadcast %cst_11 : f32 to vector<16x1xf32>
    %11 = arith.divf %9, %10 : vector<16x1xf32>
    %12 = vector.broadcast %11 : vector<16x1xf32> to vector<16x64xf32>
    %13 = arith.subf %3, %12 : vector<16x64xf32>
    %14 = arith.mulf %13, %13 : vector<16x64xf32>
    %cst_12 = arith.constant dense<0.000000e+00> : vector<16xf32>
    %15 = vector.multi_reduction <add>, %14, %cst_12 [1] : vector<16x64xf32> to vector<16xf32>
    %16 = vector.shape_cast %15 : vector<16xf32> to vector<16x1xf32>
    %cst_13 = arith.constant 6.400000e+01 : f32
    %17 = vector.broadcast %cst_13 : f32 to vector<16x1xf32>
    %18 = arith.divf %16, %17 : vector<16x1xf32>
    %19 = vector.broadcast %11 : vector<16x1xf32> to vector<16x64xf32>
    %20 = arith.subf %3, %19 : vector<16x64xf32>
    %cst_14 = arith.constant 9.99999974E-6 : f32
    %21 = vector.broadcast %cst_14 : f32 to vector<16x1xf32>
    %22 = arith.addf %18, %21 : vector<16x1xf32>
    %23 = math.rsqrt %22 : vector<16x1xf32>
    %24 = vector.broadcast %23 : vector<16x1xf32> to vector<16x64xf32>
    %25 = arith.mulf %20, %24 : vector<16x64xf32>
    %26 = vector.broadcast %5 : vector<1x64xf32> to vector<16x64xf32>
    %27 = arith.mulf %25, %26 : vector<16x64xf32>
    %28 = vector.broadcast %7 : vector<1x64xf32> to vector<16x64xf32>
    %29 = arith.addf %27, %28 : vector<16x64xf32>
    %c0_15 = arith.constant 0 : index
    %c0_16 = arith.constant 0 : index
    %c0_17 = arith.constant 0 : index
    %30 = vector.load %arg6[%c0_15, %c0_16, %c0_17] : memref<2x64x64xf32, #tpu.memory_space<vmem>>, vector<1x64x64xf32>
    %31 = vector.shape_cast %30 : vector<1x64x64xf32> to vector<64x64xf32>
    %cst_18 = arith.constant dense<0.000000e+00> : vector<16x64xf32>
    %32 = tpu.matmul %29, %31, %cst_18 {dimension_numbers = #tpu.dot_dimension_numbers<[1], [0], [0], [1], [0, 0, 1, 1], [], []>} : vector<16x64xf32>, vector<64x64xf32>, vector<16x64xf32> -> vector<16x64xf32>
    %c0_19 = arith.constant 0 : index
    %c0_20 = arith.constant 0 : index
    %c0_21 = arith.constant 0 : index
    %33 = vector.load %arg9[%c0_19, %c0_20, %c0_21] : memref<2x1x64xf32, #tpu.memory_space<vmem>>, vector<1x1x64xf32>
    %34 = vector.shape_cast %33 : vector<1x1x64xf32> to vector<1x64xf32>
    %35 = vector.broadcast %34 : vector<1x64xf32> to vector<16x64xf32>
    %36 = arith.addf %32, %35 : vector<16x64xf32>
    %c0_22 = arith.constant 0 : index
    %c0_23 = arith.constant 0 : index
    %c0_24 = arith.constant 0 : index
    %37 = vector.load %arg7[%c0_22, %c0_23, %c0_24] : memref<2x64x64xf32, #tpu.memory_space<vmem>>, vector<1x64x64xf32>
    %38 = vector.shape_cast %37 : vector<1x64x64xf32> to vector<64x64xf32>
    %cst_25 = arith.constant dense<0.000000e+00> : vector<16x64xf32>
    %39 = tpu.matmul %29, %38, %cst_25 {dimension_numbers = #tpu.dot_dimension_numbers<[1], [0], [0], [1], [0, 0, 1, 1], [], []>} : vector<16x64xf32>, vector<64x64xf32>, vector<16x64xf32> -> vector<16x64xf32>
    %c0_26 = arith.constant 0 : index
    %c0_27 = arith.constant 0 : index
    %c0_28 = arith.constant 0 : index
    %40 = vector.load %arg10[%c0_26, %c0_27, %c0_28] : memref<2x1x64xf32, #tpu.memory_space<vmem>>, vector<1x1x64xf32>
    %41 = vector.shape_cast %40 : vector<1x1x64xf32> to vector<1x64xf32>
    %42 = vector.broadcast %41 : vector<1x64xf32> to vector<16x64xf32>
    %43 = arith.addf %39, %42 : vector<16x64xf32>
    %c0_29 = arith.constant 0 : index
    %c0_30 = arith.constant 0 : index
    %c0_31 = arith.constant 0 : index
    %44 = vector.load %arg8[%c0_29, %c0_30, %c0_31] : memref<2x64x64xf32, #tpu.memory_space<vmem>>, vector<1x64x64xf32>
    %45 = vector.shape_cast %44 : vector<1x64x64xf32> to vector<64x64xf32>
    %cst_32 = arith.constant dense<0.000000e+00> : vector<16x64xf32>
    %46 = tpu.matmul %29, %45, %cst_32 {dimension_numbers = #tpu.dot_dimension_numbers<[1], [0], [0], [1], [0, 0, 1, 1], [], []>} : vector<16x64xf32>, vector<64x64xf32>, vector<16x64xf32> -> vector<16x64xf32>
    %c0_33 = arith.constant 0 : index
    %c0_34 = arith.constant 0 : index
    %c0_35 = arith.constant 0 : index
    %47 = vector.load %arg11[%c0_33, %c0_34, %c0_35] : memref<2x1x64xf32, #tpu.memory_space<vmem>>, vector<1x1x64xf32>
    %48 = vector.shape_cast %47 : vector<1x1x64xf32> to vector<1x64xf32>
    %49 = vector.broadcast %48 : vector<1x64xf32> to vector<16x64xf32>
    %50 = arith.addf %46, %49 : vector<16x64xf32>
    %c0_36 = arith.constant 0 : index
    %c0_37 = arith.constant 0 : index
    %c0_38 = arith.constant 0 : index
    %51 = vector.load %arg12[%c0_36, %c0_37, %c0_38] : memref<2x64x64xf32, #tpu.memory_space<vmem>>, vector<1x64x64xf32>
    %52 = vector.shape_cast %51 : vector<1x64x64xf32> to vector<64x64xf32>
    %cst_39 = arith.constant 0.000000e+00 : f32
    %53 = vector.broadcast %cst_39 : f32 to vector<16x64xf32>
    %54 = vector.extract_strided_slice %36 {offsets = [0, 0], sizes = [16, 16], strides = [1, 1]} : vector<16x64xf32> to vector<16x16xf32>
    %55 = vector.extract_strided_slice %43 {offsets = [0, 0], sizes = [16, 16], strides = [1, 1]} : vector<16x64xf32> to vector<16x16xf32>
    %56 = vector.extract_strided_slice %50 {offsets = [0, 0], sizes = [16, 16], strides = [1, 1]} : vector<16x64xf32> to vector<16x16xf32>
    %cst_40 = arith.constant dense<0.000000e+00> : vector<16x16xf32>
    %57 = tpu.matmul %54, %55, %cst_40 {dimension_numbers = #tpu.dot_dimension_numbers<[1], [1], [0], [0], [0, 0, 1, 0], [], []>} : vector<16x16xf32>, vector<16x16xf32>, vector<16x16xf32> -> vector<16x16xf32>
    %cst_41 = arith.constant 2.500000e-01 : f32
    %58 = vector.broadcast %cst_41 : f32 to vector<16x16xf32>
    %59 = arith.mulf %57, %58 : vector<16x16xf32>
    %60 = arith.addf %59, %0 : vector<16x16xf32>
    %cst_42 = arith.constant dense<0xFF800000> : vector<16xf32>
    %61 = vector.multi_reduction <maximumf>, %60, %cst_42 [1] : vector<16x16xf32> to vector<16xf32>
    %62 = vector.shape_cast %61 : vector<16xf32> to vector<16x1xf32>
    %63 = vector.broadcast %62 : vector<16x1xf32> to vector<16x16xf32>
    %64 = arith.subf %60, %63 : vector<16x16xf32>
    %65 = math.exp %64 : vector<16x16xf32>
    %cst_43 = arith.constant dense<0.000000e+00> : vector<16xf32>
    %66 = vector.multi_reduction <add>, %65, %cst_43 [1] : vector<16x16xf32> to vector<16xf32>
    %67 = vector.shape_cast %66 : vector<16xf32> to vector<16x1xf32>
    %68 = vector.broadcast %67 : vector<16x1xf32> to vector<16x16xf32>
    %69 = arith.divf %65, %68 : vector<16x16xf32>
    %cst_44 = arith.constant dense<0.000000e+00> : vector<16x16xf32>
    %70 = tpu.matmul %69, %56, %cst_44 {dimension_numbers = #tpu.dot_dimension_numbers<[1], [0], [0], [1], [0, 0, 1, 1], [], []>} : vector<16x16xf32>, vector<16x16xf32>, vector<16x16xf32> -> vector<16x16xf32>
    %71 = vector.extract_strided_slice %52 {offsets = [0, 0], sizes = [16, 64], strides = [1, 1]} : vector<64x64xf32> to vector<16x64xf32>
    %cst_45 = arith.constant dense<0.000000e+00> : vector<16x64xf32>
    %72 = tpu.matmul %70, %71, %cst_45 {dimension_numbers = #tpu.dot_dimension_numbers<[1], [0], [0], [1], [0, 0, 1, 1], [], []>} : vector<16x16xf32>, vector<16x64xf32>, vector<16x64xf32> -> vector<16x64xf32>
    %73 = arith.addf %53, %72 : vector<16x64xf32>
    %74 = vector.extract_strided_slice %36 {offsets = [0, 16], sizes = [16, 16], strides = [1, 1]} : vector<16x64xf32> to vector<16x16xf32>
    %75 = vector.extract_strided_slice %43 {offsets = [0, 16], sizes = [16, 16], strides = [1, 1]} : vector<16x64xf32> to vector<16x16xf32>
    %76 = vector.extract_strided_slice %50 {offsets = [0, 16], sizes = [16, 16], strides = [1, 1]} : vector<16x64xf32> to vector<16x16xf32>
    %cst_46 = arith.constant dense<0.000000e+00> : vector<16x16xf32>
    %77 = tpu.matmul %74, %75, %cst_46 {dimension_numbers = #tpu.dot_dimension_numbers<[1], [1], [0], [0], [0, 0, 1, 0], [], []>} : vector<16x16xf32>, vector<16x16xf32>, vector<16x16xf32> -> vector<16x16xf32>
    %cst_47 = arith.constant 2.500000e-01 : f32
    %78 = vector.broadcast %cst_47 : f32 to vector<16x16xf32>
    %79 = arith.mulf %77, %78 : vector<16x16xf32>
    %80 = arith.addf %79, %0 : vector<16x16xf32>
    %cst_48 = arith.constant dense<0xFF800000> : vector<16xf32>
    %81 = vector.multi_reduction <maximumf>, %80, %cst_48 [1] : vector<16x16xf32> to vector<16xf32>
    %82 = vector.shape_cast %81 : vector<16xf32> to vector<16x1xf32>
    %83 = vector.broadcast %82 : vector<16x1xf32> to vector<16x16xf32>
    %84 = arith.subf %80, %83 : vector<16x16xf32>
    %85 = math.exp %84 : vector<16x16xf32>
    %cst_49 = arith.constant dense<0.000000e+00> : vector<16xf32>
    %86 = vector.multi_reduction <add>, %85, %cst_49 [1] : vector<16x16xf32> to vector<16xf32>
    %87 = vector.shape_cast %86 : vector<16xf32> to vector<16x1xf32>
    %88 = vector.broadcast %87 : vector<16x1xf32> to vector<16x16xf32>
    %89 = arith.divf %85, %88 : vector<16x16xf32>
    %cst_50 = arith.constant dense<0.000000e+00> : vector<16x16xf32>
    %90 = tpu.matmul %89, %76, %cst_50 {dimension_numbers = #tpu.dot_dimension_numbers<[1], [0], [0], [1], [0, 0, 1, 1], [], []>} : vector<16x16xf32>, vector<16x16xf32>, vector<16x16xf32> -> vector<16x16xf32>
    %91 = vector.extract_strided_slice %52 {offsets = [16, 0], sizes = [16, 64], strides = [1, 1]} : vector<64x64xf32> to vector<16x64xf32>
    %cst_51 = arith.constant dense<0.000000e+00> : vector<16x64xf32>
    %92 = tpu.matmul %90, %91, %cst_51 {dimension_numbers = #tpu.dot_dimension_numbers<[1], [0], [0], [1], [0, 0, 1, 1], [], []>} : vector<16x16xf32>, vector<16x64xf32>, vector<16x64xf32> -> vector<16x64xf32>
    %93 = arith.addf %73, %92 : vector<16x64xf32>
    %94 = vector.extract_strided_slice %36 {offsets = [0, 32], sizes = [16, 16], strides = [1, 1]} : vector<16x64xf32> to vector<16x16xf32>
    %95 = vector.extract_strided_slice %43 {offsets = [0, 32], sizes = [16, 16], strides = [1, 1]} : vector<16x64xf32> to vector<16x16xf32>
    %96 = vector.extract_strided_slice %50 {offsets = [0, 32], sizes = [16, 16], strides = [1, 1]} : vector<16x64xf32> to vector<16x16xf32>
    %cst_52 = arith.constant dense<0.000000e+00> : vector<16x16xf32>
    %97 = tpu.matmul %94, %95, %cst_52 {dimension_numbers = #tpu.dot_dimension_numbers<[1], [1], [0], [0], [0, 0, 1, 0], [], []>} : vector<16x16xf32>, vector<16x16xf32>, vector<16x16xf32> -> vector<16x16xf32>
    %cst_53 = arith.constant 2.500000e-01 : f32
    %98 = vector.broadcast %cst_53 : f32 to vector<16x16xf32>
    %99 = arith.mulf %97, %98 : vector<16x16xf32>
    %100 = arith.addf %99, %0 : vector<16x16xf32>
    %cst_54 = arith.constant dense<0xFF800000> : vector<16xf32>
    %101 = vector.multi_reduction <maximumf>, %100, %cst_54 [1] : vector<16x16xf32> to vector<16xf32>
    %102 = vector.shape_cast %101 : vector<16xf32> to vector<16x1xf32>
    %103 = vector.broadcast %102 : vector<16x1xf32> to vector<16x16xf32>
    %104 = arith.subf %100, %103 : vector<16x16xf32>
    %105 = math.exp %104 : vector<16x16xf32>
    %cst_55 = arith.constant dense<0.000000e+00> : vector<16xf32>
    %106 = vector.multi_reduction <add>, %105, %cst_55 [1] : vector<16x16xf32> to vector<16xf32>
    %107 = vector.shape_cast %106 : vector<16xf32> to vector<16x1xf32>
    %108 = vector.broadcast %107 : vector<16x1xf32> to vector<16x16xf32>
    %109 = arith.divf %105, %108 : vector<16x16xf32>
    %cst_56 = arith.constant dense<0.000000e+00> : vector<16x16xf32>
    %110 = tpu.matmul %109, %96, %cst_56 {dimension_numbers = #tpu.dot_dimension_numbers<[1], [0], [0], [1], [0, 0, 1, 1], [], []>} : vector<16x16xf32>, vector<16x16xf32>, vector<16x16xf32> -> vector<16x16xf32>
    %111 = vector.extract_strided_slice %52 {offsets = [32, 0], sizes = [16, 64], strides = [1, 1]} : vector<64x64xf32> to vector<16x64xf32>
    %cst_57 = arith.constant dense<0.000000e+00> : vector<16x64xf32>
    %112 = tpu.matmul %110, %111, %cst_57 {dimension_numbers = #tpu.dot_dimension_numbers<[1], [0], [0], [1], [0, 0, 1, 1], [], []>} : vector<16x16xf32>, vector<16x64xf32>, vector<16x64xf32> -> vector<16x64xf32>
    %113 = arith.addf %93, %112 : vector<16x64xf32>
    %114 = vector.extract_strided_slice %36 {offsets = [0, 48], sizes = [16, 16], strides = [1, 1]} : vector<16x64xf32> to vector<16x16xf32>
    %115 = vector.extract_strided_slice %43 {offsets = [0, 48], sizes = [16, 16], strides = [1, 1]} : vector<16x64xf32> to vector<16x16xf32>
    %116 = vector.extract_strided_slice %50 {offsets = [0, 48], sizes = [16, 16], strides = [1, 1]} : vector<16x64xf32> to vector<16x16xf32>
    %cst_58 = arith.constant dense<0.000000e+00> : vector<16x16xf32>
    %117 = tpu.matmul %114, %115, %cst_58 {dimension_numbers = #tpu.dot_dimension_numbers<[1], [1], [0], [0], [0, 0, 1, 0], [], []>} : vector<16x16xf32>, vector<16x16xf32>, vector<16x16xf32> -> vector<16x16xf32>
    %cst_59 = arith.constant 2.500000e-01 : f32
    %118 = vector.broadcast %cst_59 : f32 to vector<16x16xf32>
    %119 = arith.mulf %117, %118 : vector<16x16xf32>
    %120 = arith.addf %119, %0 : vector<16x16xf32>
    %cst_60 = arith.constant dense<0xFF800000> : vector<16xf32>
    %121 = vector.multi_reduction <maximumf>, %120, %cst_60 [1] : vector<16x16xf32> to vector<16xf32>
    %122 = vector.shape_cast %121 : vector<16xf32> to vector<16x1xf32>
    %123 = vector.broadcast %122 : vector<16x1xf32> to vector<16x16xf32>
    %124 = arith.subf %120, %123 : vector<16x16xf32>
    %125 = math.exp %124 : vector<16x16xf32>
    %cst_61 = arith.constant dense<0.000000e+00> : vector<16xf32>
    %126 = vector.multi_reduction <add>, %125, %cst_61 [1] : vector<16x16xf32> to vector<16xf32>
    %127 = vector.shape_cast %126 : vector<16xf32> to vector<16x1xf32>
    %128 = vector.broadcast %127 : vector<16x1xf32> to vector<16x16xf32>
    %129 = arith.divf %125, %128 : vector<16x16xf32>
    %cst_62 = arith.constant dense<0.000000e+00> : vector<16x16xf32>
    %130 = tpu.matmul %129, %116, %cst_62 {dimension_numbers = #tpu.dot_dimension_numbers<[1], [0], [0], [1], [0, 0, 1, 1], [], []>} : vector<16x16xf32>, vector<16x16xf32>, vector<16x16xf32> -> vector<16x16xf32>
    %131 = vector.extract_strided_slice %52 {offsets = [48, 0], sizes = [16, 64], strides = [1, 1]} : vector<64x64xf32> to vector<16x64xf32>
    %cst_63 = arith.constant dense<0.000000e+00> : vector<16x64xf32>
    %132 = tpu.matmul %130, %131, %cst_63 {dimension_numbers = #tpu.dot_dimension_numbers<[1], [0], [0], [1], [0, 0, 1, 1], [], []>} : vector<16x16xf32>, vector<16x64xf32>, vector<16x64xf32> -> vector<16x64xf32>
    %133 = arith.addf %113, %132 : vector<16x64xf32>
    %134 = arith.addf %3, %133 : vector<16x64xf32>
    %c0_64 = arith.constant 0 : index
    %c0_65 = arith.constant 0 : index
    %c0_66 = arith.constant 0 : index
    %135 = vector.load %arg13[%c0_64, %c0_65, %c0_66] : memref<2x1x64xf32, #tpu.memory_space<vmem>>, vector<1x1x64xf32>
    %136 = vector.shape_cast %135 : vector<1x1x64xf32> to vector<1x64xf32>
    %137 = vector.broadcast %136 : vector<1x64xf32> to vector<16x64xf32>
    %138 = arith.addf %134, %137 : vector<16x64xf32>
    %c0_67 = arith.constant 0 : index
    %c0_68 = arith.constant 0 : index
    %c0_69 = arith.constant 0 : index
    %139 = vector.load %arg14[%c0_67, %c0_68, %c0_69] : memref<2x1x64xf32, #tpu.memory_space<vmem>>, vector<1x1x64xf32>
    %140 = vector.shape_cast %139 : vector<1x1x64xf32> to vector<1x64xf32>
    %c0_70 = arith.constant 0 : index
    %c0_71 = arith.constant 0 : index
    %c0_72 = arith.constant 0 : index
    %141 = vector.load %arg15[%c0_70, %c0_71, %c0_72] : memref<2x1x64xf32, #tpu.memory_space<vmem>>, vector<1x1x64xf32>
    %142 = vector.shape_cast %141 : vector<1x1x64xf32> to vector<1x64xf32>
    %cst_73 = arith.constant dense<0.000000e+00> : vector<16xf32>
    %143 = vector.multi_reduction <add>, %138, %cst_73 [1] : vector<16x64xf32> to vector<16xf32>
    %144 = vector.shape_cast %143 : vector<16xf32> to vector<16x1xf32>
    %cst_74 = arith.constant 6.400000e+01 : f32
    %145 = vector.broadcast %cst_74 : f32 to vector<16x1xf32>
    %146 = arith.divf %144, %145 : vector<16x1xf32>
    %147 = vector.broadcast %146 : vector<16x1xf32> to vector<16x64xf32>
    %148 = arith.subf %138, %147 : vector<16x64xf32>
    %149 = arith.mulf %148, %148 : vector<16x64xf32>
    %cst_75 = arith.constant dense<0.000000e+00> : vector<16xf32>
    %150 = vector.multi_reduction <add>, %149, %cst_75 [1] : vector<16x64xf32> to vector<16xf32>
    %151 = vector.shape_cast %150 : vector<16xf32> to vector<16x1xf32>
    %cst_76 = arith.constant 6.400000e+01 : f32
    %152 = vector.broadcast %cst_76 : f32 to vector<16x1xf32>
    %153 = arith.divf %151, %152 : vector<16x1xf32>
    %154 = vector.broadcast %146 : vector<16x1xf32> to vector<16x64xf32>
    %155 = arith.subf %138, %154 : vector<16x64xf32>
    %cst_77 = arith.constant 9.99999974E-6 : f32
    %156 = vector.broadcast %cst_77 : f32 to vector<16x1xf32>
    %157 = arith.addf %153, %156 : vector<16x1xf32>
    %158 = math.rsqrt %157 : vector<16x1xf32>
    %159 = vector.broadcast %158 : vector<16x1xf32> to vector<16x64xf32>
    %160 = arith.mulf %155, %159 : vector<16x64xf32>
    %161 = vector.broadcast %140 : vector<1x64xf32> to vector<16x64xf32>
    %162 = arith.mulf %160, %161 : vector<16x64xf32>
    %163 = vector.broadcast %142 : vector<1x64xf32> to vector<16x64xf32>
    %164 = arith.addf %162, %163 : vector<16x64xf32>
    %c0_78 = arith.constant 0 : index
    %c0_79 = arith.constant 0 : index
    %c0_80 = arith.constant 0 : index
    %165 = vector.load %arg16[%c0_78, %c0_79, %c0_80] : memref<2x64x256xf32, #tpu.memory_space<vmem>>, vector<1x64x256xf32>
    %166 = vector.shape_cast %165 : vector<1x64x256xf32> to vector<64x256xf32>
    %cst_81 = arith.constant dense<0.000000e+00> : vector<16x256xf32>
    %167 = tpu.matmul %164, %166, %cst_81 {dimension_numbers = #tpu.dot_dimension_numbers<[1], [0], [0], [1], [0, 0, 1, 1], [], []>} : vector<16x64xf32>, vector<64x256xf32>, vector<16x256xf32> -> vector<16x256xf32>
    %c0_82 = arith.constant 0 : index
    %c0_83 = arith.constant 0 : index
    %c0_84 = arith.constant 0 : index
    %168 = vector.load %arg17[%c0_82, %c0_83, %c0_84] : memref<2x1x256xf32, #tpu.memory_space<vmem>>, vector<1x1x256xf32>
    %169 = vector.shape_cast %168 : vector<1x1x256xf32> to vector<1x256xf32>
    %170 = vector.broadcast %169 : vector<1x256xf32> to vector<16x256xf32>
    %171 = arith.addf %167, %170 : vector<16x256xf32>
    %cst_85 = arith.constant 1.702000e+00 : f32
    %172 = vector.broadcast %cst_85 : f32 to vector<16x256xf32>
    %173 = arith.mulf %172, %171 : vector<16x256xf32>
    %174 = arith.negf %173 : vector<16x256xf32>
    %175 = math.exp %174 : vector<16x256xf32>
    %cst_86 = arith.constant 1.000000e+00 : f32
    %176 = vector.broadcast %cst_86 : f32 to vector<16x256xf32>
    %177 = arith.addf %176, %175 : vector<16x256xf32>
    %178 = arith.divf %176, %177 : vector<16x256xf32>
    %179 = arith.mulf %171, %178 : vector<16x256xf32>
    %c0_87 = arith.constant 0 : index
    %c0_88 = arith.constant 0 : index
    %c0_89 = arith.constant 0 : index
    %180 = vector.load %arg18[%c0_87, %c0_88, %c0_89] : memref<2x256x64xf32, #tpu.memory_space<vmem>>, vector<1x256x64xf32>
    %181 = vector.shape_cast %180 : vector<1x256x64xf32> to vector<256x64xf32>
    %cst_90 = arith.constant dense<0.000000e+00> : vector<16x64xf32>
    %182 = tpu.matmul %179, %181, %cst_90 {dimension_numbers = #tpu.dot_dimension_numbers<[1], [0], [0], [1], [0, 0, 1, 1], [], []>} : vector<16x256xf32>, vector<256x64xf32>, vector<16x64xf32> -> vector<16x64xf32>
    %183 = arith.addf %138, %182 : vector<16x64xf32>
    %c0_91 = arith.constant 0 : index
    %c0_92 = arith.constant 0 : index
    %c0_93 = arith.constant 0 : index
    %184 = vector.load %arg19[%c0_91, %c0_92, %c0_93] : memref<2x1x64xf32, #tpu.memory_space<vmem>>, vector<1x1x64xf32>
    %185 = vector.shape_cast %184 : vector<1x1x64xf32> to vector<1x64xf32>
    %186 = vector.broadcast %185 : vector<1x64xf32> to vector<16x64xf32>
    %187 = arith.addf %183, %186 : vector<16x64xf32>
    %c1 = arith.constant 1 : index
    %c0_94 = arith.constant 0 : index
    %c0_95 = arith.constant 0 : index
    %188 = vector.load %arg4[%c1, %c0_94, %c0_95] : memref<2x1x64xf32, #tpu.memory_space<vmem>>, vector<1x1x64xf32>
    %189 = vector.shape_cast %188 : vector<1x1x64xf32> to vector<1x64xf32>
    %c1_96 = arith.constant 1 : index
    %c0_97 = arith.constant 0 : index
    %c0_98 = arith.constant 0 : index
    %190 = vector.load %arg5[%c1_96, %c0_97, %c0_98] : memref<2x1x64xf32, #tpu.memory_space<vmem>>, vector<1x1x64xf32>
    %191 = vector.shape_cast %190 : vector<1x1x64xf32> to vector<1x64xf32>
    %cst_99 = arith.constant dense<0.000000e+00> : vector<16xf32>
    %192 = vector.multi_reduction <add>, %187, %cst_99 [1] : vector<16x64xf32> to vector<16xf32>
    %193 = vector.shape_cast %192 : vector<16xf32> to vector<16x1xf32>
    %cst_100 = arith.constant 6.400000e+01 : f32
    %194 = vector.broadcast %cst_100 : f32 to vector<16x1xf32>
    %195 = arith.divf %193, %194 : vector<16x1xf32>
    %196 = vector.broadcast %195 : vector<16x1xf32> to vector<16x64xf32>
    %197 = arith.subf %187, %196 : vector<16x64xf32>
    %198 = arith.mulf %197, %197 : vector<16x64xf32>
    %cst_101 = arith.constant dense<0.000000e+00> : vector<16xf32>
    %199 = vector.multi_reduction <add>, %198, %cst_101 [1] : vector<16x64xf32> to vector<16xf32>
    %200 = vector.shape_cast %199 : vector<16xf32> to vector<16x1xf32>
    %cst_102 = arith.constant 6.400000e+01 : f32
    %201 = vector.broadcast %cst_102 : f32 to vector<16x1xf32>
    %202 = arith.divf %200, %201 : vector<16x1xf32>
    %203 = vector.broadcast %195 : vector<16x1xf32> to vector<16x64xf32>
    %204 = arith.subf %187, %203 : vector<16x64xf32>
    %cst_103 = arith.constant 9.99999974E-6 : f32
    %205 = vector.broadcast %cst_103 : f32 to vector<16x1xf32>
    %206 = arith.addf %202, %205 : vector<16x1xf32>
    %207 = math.rsqrt %206 : vector<16x1xf32>
    %208 = vector.broadcast %207 : vector<16x1xf32> to vector<16x64xf32>
    %209 = arith.mulf %204, %208 : vector<16x64xf32>
    %210 = vector.broadcast %189 : vector<1x64xf32> to vector<16x64xf32>
    %211 = arith.mulf %209, %210 : vector<16x64xf32>
    %212 = vector.broadcast %191 : vector<1x64xf32> to vector<16x64xf32>
    %213 = arith.addf %211, %212 : vector<16x64xf32>
    %c1_104 = arith.constant 1 : index
    %c0_105 = arith.constant 0 : index
    %c0_106 = arith.constant 0 : index
    %214 = vector.load %arg6[%c1_104, %c0_105, %c0_106] : memref<2x64x64xf32, #tpu.memory_space<vmem>>, vector<1x64x64xf32>
    %215 = vector.shape_cast %214 : vector<1x64x64xf32> to vector<64x64xf32>
    %cst_107 = arith.constant dense<0.000000e+00> : vector<16x64xf32>
    %216 = tpu.matmul %213, %215, %cst_107 {dimension_numbers = #tpu.dot_dimension_numbers<[1], [0], [0], [1], [0, 0, 1, 1], [], []>} : vector<16x64xf32>, vector<64x64xf32>, vector<16x64xf32> -> vector<16x64xf32>
    %c1_108 = arith.constant 1 : index
    %c0_109 = arith.constant 0 : index
    %c0_110 = arith.constant 0 : index
    %217 = vector.load %arg9[%c1_108, %c0_109, %c0_110] : memref<2x1x64xf32, #tpu.memory_space<vmem>>, vector<1x1x64xf32>
    %218 = vector.shape_cast %217 : vector<1x1x64xf32> to vector<1x64xf32>
    %219 = vector.broadcast %218 : vector<1x64xf32> to vector<16x64xf32>
    %220 = arith.addf %216, %219 : vector<16x64xf32>
    %c1_111 = arith.constant 1 : index
    %c0_112 = arith.constant 0 : index
    %c0_113 = arith.constant 0 : index
    %221 = vector.load %arg7[%c1_111, %c0_112, %c0_113] : memref<2x64x64xf32, #tpu.memory_space<vmem>>, vector<1x64x64xf32>
    %222 = vector.shape_cast %221 : vector<1x64x64xf32> to vector<64x64xf32>
    %cst_114 = arith.constant dense<0.000000e+00> : vector<16x64xf32>
    %223 = tpu.matmul %213, %222, %cst_114 {dimension_numbers = #tpu.dot_dimension_numbers<[1], [0], [0], [1], [0, 0, 1, 1], [], []>} : vector<16x64xf32>, vector<64x64xf32>, vector<16x64xf32> -> vector<16x64xf32>
    %c1_115 = arith.constant 1 : index
    %c0_116 = arith.constant 0 : index
    %c0_117 = arith.constant 0 : index
    %224 = vector.load %arg10[%c1_115, %c0_116, %c0_117] : memref<2x1x64xf32, #tpu.memory_space<vmem>>, vector<1x1x64xf32>
    %225 = vector.shape_cast %224 : vector<1x1x64xf32> to vector<1x64xf32>
    %226 = vector.broadcast %225 : vector<1x64xf32> to vector<16x64xf32>
    %227 = arith.addf %223, %226 : vector<16x64xf32>
    %c1_118 = arith.constant 1 : index
    %c0_119 = arith.constant 0 : index
    %c0_120 = arith.constant 0 : index
    %228 = vector.load %arg8[%c1_118, %c0_119, %c0_120] : memref<2x64x64xf32, #tpu.memory_space<vmem>>, vector<1x64x64xf32>
    %229 = vector.shape_cast %228 : vector<1x64x64xf32> to vector<64x64xf32>
    %cst_121 = arith.constant dense<0.000000e+00> : vector<16x64xf32>
    %230 = tpu.matmul %213, %229, %cst_121 {dimension_numbers = #tpu.dot_dimension_numbers<[1], [0], [0], [1], [0, 0, 1, 1], [], []>} : vector<16x64xf32>, vector<64x64xf32>, vector<16x64xf32> -> vector<16x64xf32>
    %c1_122 = arith.constant 1 : index
    %c0_123 = arith.constant 0 : index
    %c0_124 = arith.constant 0 : index
    %231 = vector.load %arg11[%c1_122, %c0_123, %c0_124] : memref<2x1x64xf32, #tpu.memory_space<vmem>>, vector<1x1x64xf32>
    %232 = vector.shape_cast %231 : vector<1x1x64xf32> to vector<1x64xf32>
    %233 = vector.broadcast %232 : vector<1x64xf32> to vector<16x64xf32>
    %234 = arith.addf %230, %233 : vector<16x64xf32>
    %c1_125 = arith.constant 1 : index
    %c0_126 = arith.constant 0 : index
    %c0_127 = arith.constant 0 : index
    %235 = vector.load %arg12[%c1_125, %c0_126, %c0_127] : memref<2x64x64xf32, #tpu.memory_space<vmem>>, vector<1x64x64xf32>
    %236 = vector.shape_cast %235 : vector<1x64x64xf32> to vector<64x64xf32>
    %cst_128 = arith.constant 0.000000e+00 : f32
    %237 = vector.broadcast %cst_128 : f32 to vector<16x64xf32>
    %238 = vector.extract_strided_slice %220 {offsets = [0, 0], sizes = [16, 16], strides = [1, 1]} : vector<16x64xf32> to vector<16x16xf32>
    %239 = vector.extract_strided_slice %227 {offsets = [0, 0], sizes = [16, 16], strides = [1, 1]} : vector<16x64xf32> to vector<16x16xf32>
    %240 = vector.extract_strided_slice %234 {offsets = [0, 0], sizes = [16, 16], strides = [1, 1]} : vector<16x64xf32> to vector<16x16xf32>
    %cst_129 = arith.constant dense<0.000000e+00> : vector<16x16xf32>
    %241 = tpu.matmul %238, %239, %cst_129 {dimension_numbers = #tpu.dot_dimension_numbers<[1], [1], [0], [0], [0, 0, 1, 0], [], []>} : vector<16x16xf32>, vector<16x16xf32>, vector<16x16xf32> -> vector<16x16xf32>
    %cst_130 = arith.constant 2.500000e-01 : f32
    %242 = vector.broadcast %cst_130 : f32 to vector<16x16xf32>
    %243 = arith.mulf %241, %242 : vector<16x16xf32>
    %244 = arith.addf %243, %0 : vector<16x16xf32>
    %cst_131 = arith.constant dense<0xFF800000> : vector<16xf32>
    %245 = vector.multi_reduction <maximumf>, %244, %cst_131 [1] : vector<16x16xf32> to vector<16xf32>
    %246 = vector.shape_cast %245 : vector<16xf32> to vector<16x1xf32>
    %247 = vector.broadcast %246 : vector<16x1xf32> to vector<16x16xf32>
    %248 = arith.subf %244, %247 : vector<16x16xf32>
    %249 = math.exp %248 : vector<16x16xf32>
    %cst_132 = arith.constant dense<0.000000e+00> : vector<16xf32>
    %250 = vector.multi_reduction <add>, %249, %cst_132 [1] : vector<16x16xf32> to vector<16xf32>
    %251 = vector.shape_cast %250 : vector<16xf32> to vector<16x1xf32>
    %252 = vector.broadcast %251 : vector<16x1xf32> to vector<16x16xf32>
    %253 = arith.divf %249, %252 : vector<16x16xf32>
    %cst_133 = arith.constant dense<0.000000e+00> : vector<16x16xf32>
    %254 = tpu.matmul %253, %240, %cst_133 {dimension_numbers = #tpu.dot_dimension_numbers<[1], [0], [0], [1], [0, 0, 1, 1], [], []>} : vector<16x16xf32>, vector<16x16xf32>, vector<16x16xf32> -> vector<16x16xf32>
    %255 = vector.extract_strided_slice %236 {offsets = [0, 0], sizes = [16, 64], strides = [1, 1]} : vector<64x64xf32> to vector<16x64xf32>
    %cst_134 = arith.constant dense<0.000000e+00> : vector<16x64xf32>
    %256 = tpu.matmul %254, %255, %cst_134 {dimension_numbers = #tpu.dot_dimension_numbers<[1], [0], [0], [1], [0, 0, 1, 1], [], []>} : vector<16x16xf32>, vector<16x64xf32>, vector<16x64xf32> -> vector<16x64xf32>
    %257 = arith.addf %237, %256 : vector<16x64xf32>
    %258 = vector.extract_strided_slice %220 {offsets = [0, 16], sizes = [16, 16], strides = [1, 1]} : vector<16x64xf32> to vector<16x16xf32>
    %259 = vector.extract_strided_slice %227 {offsets = [0, 16], sizes = [16, 16], strides = [1, 1]} : vector<16x64xf32> to vector<16x16xf32>
    %260 = vector.extract_strided_slice %234 {offsets = [0, 16], sizes = [16, 16], strides = [1, 1]} : vector<16x64xf32> to vector<16x16xf32>
    %cst_135 = arith.constant dense<0.000000e+00> : vector<16x16xf32>
    %261 = tpu.matmul %258, %259, %cst_135 {dimension_numbers = #tpu.dot_dimension_numbers<[1], [1], [0], [0], [0, 0, 1, 0], [], []>} : vector<16x16xf32>, vector<16x16xf32>, vector<16x16xf32> -> vector<16x16xf32>
    %cst_136 = arith.constant 2.500000e-01 : f32
    %262 = vector.broadcast %cst_136 : f32 to vector<16x16xf32>
    %263 = arith.mulf %261, %262 : vector<16x16xf32>
    %264 = arith.addf %263, %0 : vector<16x16xf32>
    %cst_137 = arith.constant dense<0xFF800000> : vector<16xf32>
    %265 = vector.multi_reduction <maximumf>, %264, %cst_137 [1] : vector<16x16xf32> to vector<16xf32>
    %266 = vector.shape_cast %265 : vector<16xf32> to vector<16x1xf32>
    %267 = vector.broadcast %266 : vector<16x1xf32> to vector<16x16xf32>
    %268 = arith.subf %264, %267 : vector<16x16xf32>
    %269 = math.exp %268 : vector<16x16xf32>
    %cst_138 = arith.constant dense<0.000000e+00> : vector<16xf32>
    %270 = vector.multi_reduction <add>, %269, %cst_138 [1] : vector<16x16xf32> to vector<16xf32>
    %271 = vector.shape_cast %270 : vector<16xf32> to vector<16x1xf32>
    %272 = vector.broadcast %271 : vector<16x1xf32> to vector<16x16xf32>
    %273 = arith.divf %269, %272 : vector<16x16xf32>
    %cst_139 = arith.constant dense<0.000000e+00> : vector<16x16xf32>
    %274 = tpu.matmul %273, %260, %cst_139 {dimension_numbers = #tpu.dot_dimension_numbers<[1], [0], [0], [1], [0, 0, 1, 1], [], []>} : vector<16x16xf32>, vector<16x16xf32>, vector<16x16xf32> -> vector<16x16xf32>
    %275 = vector.extract_strided_slice %236 {offsets = [16, 0], sizes = [16, 64], strides = [1, 1]} : vector<64x64xf32> to vector<16x64xf32>
    %cst_140 = arith.constant dense<0.000000e+00> : vector<16x64xf32>
    %276 = tpu.matmul %274, %275, %cst_140 {dimension_numbers = #tpu.dot_dimension_numbers<[1], [0], [0], [1], [0, 0, 1, 1], [], []>} : vector<16x16xf32>, vector<16x64xf32>, vector<16x64xf32> -> vector<16x64xf32>
    %277 = arith.addf %257, %276 : vector<16x64xf32>
    %278 = vector.extract_strided_slice %220 {offsets = [0, 32], sizes = [16, 16], strides = [1, 1]} : vector<16x64xf32> to vector<16x16xf32>
    %279 = vector.extract_strided_slice %227 {offsets = [0, 32], sizes = [16, 16], strides = [1, 1]} : vector<16x64xf32> to vector<16x16xf32>
    %280 = vector.extract_strided_slice %234 {offsets = [0, 32], sizes = [16, 16], strides = [1, 1]} : vector<16x64xf32> to vector<16x16xf32>
    %cst_141 = arith.constant dense<0.000000e+00> : vector<16x16xf32>
    %281 = tpu.matmul %278, %279, %cst_141 {dimension_numbers = #tpu.dot_dimension_numbers<[1], [1], [0], [0], [0, 0, 1, 0], [], []>} : vector<16x16xf32>, vector<16x16xf32>, vector<16x16xf32> -> vector<16x16xf32>
    %cst_142 = arith.constant 2.500000e-01 : f32
    %282 = vector.broadcast %cst_142 : f32 to vector<16x16xf32>
    %283 = arith.mulf %281, %282 : vector<16x16xf32>
    %284 = arith.addf %283, %0 : vector<16x16xf32>
    %cst_143 = arith.constant dense<0xFF800000> : vector<16xf32>
    %285 = vector.multi_reduction <maximumf>, %284, %cst_143 [1] : vector<16x16xf32> to vector<16xf32>
    %286 = vector.shape_cast %285 : vector<16xf32> to vector<16x1xf32>
    %287 = vector.broadcast %286 : vector<16x1xf32> to vector<16x16xf32>
    %288 = arith.subf %284, %287 : vector<16x16xf32>
    %289 = math.exp %288 : vector<16x16xf32>
    %cst_144 = arith.constant dense<0.000000e+00> : vector<16xf32>
    %290 = vector.multi_reduction <add>, %289, %cst_144 [1] : vector<16x16xf32> to vector<16xf32>
    %291 = vector.shape_cast %290 : vector<16xf32> to vector<16x1xf32>
    %292 = vector.broadcast %291 : vector<16x1xf32> to vector<16x16xf32>
    %293 = arith.divf %289, %292 : vector<16x16xf32>
    %cst_145 = arith.constant dense<0.000000e+00> : vector<16x16xf32>
    %294 = tpu.matmul %293, %280, %cst_145 {dimension_numbers = #tpu.dot_dimension_numbers<[1], [0], [0], [1], [0, 0, 1, 1], [], []>} : vector<16x16xf32>, vector<16x16xf32>, vector<16x16xf32> -> vector<16x16xf32>
    %295 = vector.extract_strided_slice %236 {offsets = [32, 0], sizes = [16, 64], strides = [1, 1]} : vector<64x64xf32> to vector<16x64xf32>
    %cst_146 = arith.constant dense<0.000000e+00> : vector<16x64xf32>
    %296 = tpu.matmul %294, %295, %cst_146 {dimension_numbers = #tpu.dot_dimension_numbers<[1], [0], [0], [1], [0, 0, 1, 1], [], []>} : vector<16x16xf32>, vector<16x64xf32>, vector<16x64xf32> -> vector<16x64xf32>
    %297 = arith.addf %277, %296 : vector<16x64xf32>
    %298 = vector.extract_strided_slice %220 {offsets = [0, 48], sizes = [16, 16], strides = [1, 1]} : vector<16x64xf32> to vector<16x16xf32>
    %299 = vector.extract_strided_slice %227 {offsets = [0, 48], sizes = [16, 16], strides = [1, 1]} : vector<16x64xf32> to vector<16x16xf32>
    %300 = vector.extract_strided_slice %234 {offsets = [0, 48], sizes = [16, 16], strides = [1, 1]} : vector<16x64xf32> to vector<16x16xf32>
    %cst_147 = arith.constant dense<0.000000e+00> : vector<16x16xf32>
    %301 = tpu.matmul %298, %299, %cst_147 {dimension_numbers = #tpu.dot_dimension_numbers<[1], [1], [0], [0], [0, 0, 1, 0], [], []>} : vector<16x16xf32>, vector<16x16xf32>, vector<16x16xf32> -> vector<16x16xf32>
    %cst_148 = arith.constant 2.500000e-01 : f32
    %302 = vector.broadcast %cst_148 : f32 to vector<16x16xf32>
    %303 = arith.mulf %301, %302 : vector<16x16xf32>
    %304 = arith.addf %303, %0 : vector<16x16xf32>
    %cst_149 = arith.constant dense<0xFF800000> : vector<16xf32>
    %305 = vector.multi_reduction <maximumf>, %304, %cst_149 [1] : vector<16x16xf32> to vector<16xf32>
    %306 = vector.shape_cast %305 : vector<16xf32> to vector<16x1xf32>
    %307 = vector.broadcast %306 : vector<16x1xf32> to vector<16x16xf32>
    %308 = arith.subf %304, %307 : vector<16x16xf32>
    %309 = math.exp %308 : vector<16x16xf32>
    %cst_150 = arith.constant dense<0.000000e+00> : vector<16xf32>
    %310 = vector.multi_reduction <add>, %309, %cst_150 [1] : vector<16x16xf32> to vector<16xf32>
    %311 = vector.shape_cast %310 : vector<16xf32> to vector<16x1xf32>
    %312 = vector.broadcast %311 : vector<16x1xf32> to vector<16x16xf32>
    %313 = arith.divf %309, %312 : vector<16x16xf32>
    %cst_151 = arith.constant dense<0.000000e+00> : vector<16x16xf32>
    %314 = tpu.matmul %313, %300, %cst_151 {dimension_numbers = #tpu.dot_dimension_numbers<[1], [0], [0], [1], [0, 0, 1, 1], [], []>} : vector<16x16xf32>, vector<16x16xf32>, vector<16x16xf32> -> vector<16x16xf32>
    %315 = vector.extract_strided_slice %236 {offsets = [48, 0], sizes = [16, 64], strides = [1, 1]} : vector<64x64xf32> to vector<16x64xf32>
    %cst_152 = arith.constant dense<0.000000e+00> : vector<16x64xf32>
    %316 = tpu.matmul %314, %315, %cst_152 {dimension_numbers = #tpu.dot_dimension_numbers<[1], [0], [0], [1], [0, 0, 1, 1], [], []>} : vector<16x16xf32>, vector<16x64xf32>, vector<16x64xf32> -> vector<16x64xf32>
    %317 = arith.addf %297, %316 : vector<16x64xf32>
    %318 = arith.addf %187, %317 : vector<16x64xf32>
    %c1_153 = arith.constant 1 : index
    %c0_154 = arith.constant 0 : index
    %c0_155 = arith.constant 0 : index
    %319 = vector.load %arg13[%c1_153, %c0_154, %c0_155] : memref<2x1x64xf32, #tpu.memory_space<vmem>>, vector<1x1x64xf32>
    %320 = vector.shape_cast %319 : vector<1x1x64xf32> to vector<1x64xf32>
    %321 = vector.broadcast %320 : vector<1x64xf32> to vector<16x64xf32>
    %322 = arith.addf %318, %321 : vector<16x64xf32>
    %c1_156 = arith.constant 1 : index
    %c0_157 = arith.constant 0 : index
    %c0_158 = arith.constant 0 : index
    %323 = vector.load %arg14[%c1_156, %c0_157, %c0_158] : memref<2x1x64xf32, #tpu.memory_space<vmem>>, vector<1x1x64xf32>
    %324 = vector.shape_cast %323 : vector<1x1x64xf32> to vector<1x64xf32>
    %c1_159 = arith.constant 1 : index
    %c0_160 = arith.constant 0 : index
    %c0_161 = arith.constant 0 : index
    %325 = vector.load %arg15[%c1_159, %c0_160, %c0_161] : memref<2x1x64xf32, #tpu.memory_space<vmem>>, vector<1x1x64xf32>
    %326 = vector.shape_cast %325 : vector<1x1x64xf32> to vector<1x64xf32>
    %cst_162 = arith.constant dense<0.000000e+00> : vector<16xf32>
    %327 = vector.multi_reduction <add>, %322, %cst_162 [1] : vector<16x64xf32> to vector<16xf32>
    %328 = vector.shape_cast %327 : vector<16xf32> to vector<16x1xf32>
    %cst_163 = arith.constant 6.400000e+01 : f32
    %329 = vector.broadcast %cst_163 : f32 to vector<16x1xf32>
    %330 = arith.divf %328, %329 : vector<16x1xf32>
    %331 = vector.broadcast %330 : vector<16x1xf32> to vector<16x64xf32>
    %332 = arith.subf %322, %331 : vector<16x64xf32>
    %333 = arith.mulf %332, %332 : vector<16x64xf32>
    %cst_164 = arith.constant dense<0.000000e+00> : vector<16xf32>
    %334 = vector.multi_reduction <add>, %333, %cst_164 [1] : vector<16x64xf32> to vector<16xf32>
    %335 = vector.shape_cast %334 : vector<16xf32> to vector<16x1xf32>
    %cst_165 = arith.constant 6.400000e+01 : f32
    %336 = vector.broadcast %cst_165 : f32 to vector<16x1xf32>
    %337 = arith.divf %335, %336 : vector<16x1xf32>
    %338 = vector.broadcast %330 : vector<16x1xf32> to vector<16x64xf32>
    %339 = arith.subf %322, %338 : vector<16x64xf32>
    %cst_166 = arith.constant 9.99999974E-6 : f32
    %340 = vector.broadcast %cst_166 : f32 to vector<16x1xf32>
    %341 = arith.addf %337, %340 : vector<16x1xf32>
    %342 = math.rsqrt %341 : vector<16x1xf32>
    %343 = vector.broadcast %342 : vector<16x1xf32> to vector<16x64xf32>
    %344 = arith.mulf %339, %343 : vector<16x64xf32>
    %345 = vector.broadcast %324 : vector<1x64xf32> to vector<16x64xf32>
    %346 = arith.mulf %344, %345 : vector<16x64xf32>
    %347 = vector.broadcast %326 : vector<1x64xf32> to vector<16x64xf32>
    %348 = arith.addf %346, %347 : vector<16x64xf32>
    %c1_167 = arith.constant 1 : index
    %c0_168 = arith.constant 0 : index
    %c0_169 = arith.constant 0 : index
    %349 = vector.load %arg16[%c1_167, %c0_168, %c0_169] : memref<2x64x256xf32, #tpu.memory_space<vmem>>, vector<1x64x256xf32>
    %350 = vector.shape_cast %349 : vector<1x64x256xf32> to vector<64x256xf32>
    %cst_170 = arith.constant dense<0.000000e+00> : vector<16x256xf32>
    %351 = tpu.matmul %348, %350, %cst_170 {dimension_numbers = #tpu.dot_dimension_numbers<[1], [0], [0], [1], [0, 0, 1, 1], [], []>} : vector<16x64xf32>, vector<64x256xf32>, vector<16x256xf32> -> vector<16x256xf32>
    %c1_171 = arith.constant 1 : index
    %c0_172 = arith.constant 0 : index
    %c0_173 = arith.constant 0 : index
    %352 = vector.load %arg17[%c1_171, %c0_172, %c0_173] : memref<2x1x256xf32, #tpu.memory_space<vmem>>, vector<1x1x256xf32>
    %353 = vector.shape_cast %352 : vector<1x1x256xf32> to vector<1x256xf32>
    %354 = vector.broadcast %353 : vector<1x256xf32> to vector<16x256xf32>
    %355 = arith.addf %351, %354 : vector<16x256xf32>
    %cst_174 = arith.constant 1.702000e+00 : f32
    %356 = vector.broadcast %cst_174 : f32 to vector<16x256xf32>
    %357 = arith.mulf %356, %355 : vector<16x256xf32>
    %358 = arith.negf %357 : vector<16x256xf32>
    %359 = math.exp %358 : vector<16x256xf32>
    %cst_175 = arith.constant 1.000000e+00 : f32
    %360 = vector.broadcast %cst_175 : f32 to vector<16x256xf32>
    %361 = arith.addf %360, %359 : vector<16x256xf32>
    %362 = arith.divf %360, %361 : vector<16x256xf32>
    %363 = arith.mulf %355, %362 : vector<16x256xf32>
    %c1_176 = arith.constant 1 : index
    %c0_177 = arith.constant 0 : index
    %c0_178 = arith.constant 0 : index
    %364 = vector.load %arg18[%c1_176, %c0_177, %c0_178] : memref<2x256x64xf32, #tpu.memory_space<vmem>>, vector<1x256x64xf32>
    %365 = vector.shape_cast %364 : vector<1x256x64xf32> to vector<256x64xf32>
    %cst_179 = arith.constant dense<0.000000e+00> : vector<16x64xf32>
    %366 = tpu.matmul %363, %365, %cst_179 {dimension_numbers = #tpu.dot_dimension_numbers<[1], [0], [0], [1], [0, 0, 1, 1], [], []>} : vector<16x256xf32>, vector<256x64xf32>, vector<16x64xf32> -> vector<16x64xf32>
    %367 = arith.addf %322, %366 : vector<16x64xf32>
    %c1_180 = arith.constant 1 : index
    %c0_181 = arith.constant 0 : index
    %c0_182 = arith.constant 0 : index
    %368 = vector.load %arg19[%c1_180, %c0_181, %c0_182] : memref<2x1x64xf32, #tpu.memory_space<vmem>>, vector<1x1x64xf32>
    %369 = vector.shape_cast %368 : vector<1x1x64xf32> to vector<1x64xf32>
    %370 = vector.broadcast %369 : vector<1x64xf32> to vector<16x64xf32>
    %371 = arith.addf %367, %370 : vector<16x64xf32>
    %c0_183 = arith.constant 0 : index
    %c0_184 = arith.constant 0 : index
    %372 = vector.load %arg3[%c0_183, %c0_184] : memref<2x16xf32, #tpu.memory_space<vmem>>, vector<2x16xf32>
    %cst_185 = arith.constant dense<0.000000e+00> : vector<2x64xf32>
    %373 = tpu.matmul %372, %371, %cst_185 {dimension_numbers = #tpu.dot_dimension_numbers<[1], [0], [0], [1], [0, 0, 1, 1], [], []>} : vector<2x16xf32>, vector<16x64xf32>, vector<2x64xf32> -> vector<2x64xf32>
    %c0_186 = arith.constant 0 : index
    %c0_187 = arith.constant 0 : index
    %374 = vector.load %arg20[%c0_186, %c0_187] : memref<1x64xf32, #tpu.memory_space<vmem>>, vector<1x64xf32>
    %c0_188 = arith.constant 0 : index
    %c0_189 = arith.constant 0 : index
    %375 = vector.load %arg21[%c0_188, %c0_189] : memref<1x64xf32, #tpu.memory_space<vmem>>, vector<1x64xf32>
    %cst_190 = arith.constant dense<0.000000e+00> : vector<2xf32>
    %376 = vector.multi_reduction <add>, %373, %cst_190 [1] : vector<2x64xf32> to vector<2xf32>
    %377 = vector.shape_cast %376 : vector<2xf32> to vector<2x1xf32>
    %cst_191 = arith.constant 6.400000e+01 : f32
    %378 = vector.broadcast %cst_191 : f32 to vector<2x1xf32>
    %379 = arith.divf %377, %378 : vector<2x1xf32>
    %380 = vector.broadcast %379 : vector<2x1xf32> to vector<2x64xf32>
    %381 = arith.subf %373, %380 : vector<2x64xf32>
    %382 = arith.mulf %381, %381 : vector<2x64xf32>
    %cst_192 = arith.constant dense<0.000000e+00> : vector<2xf32>
    %383 = vector.multi_reduction <add>, %382, %cst_192 [1] : vector<2x64xf32> to vector<2xf32>
    %384 = vector.shape_cast %383 : vector<2xf32> to vector<2x1xf32>
    %cst_193 = arith.constant 6.400000e+01 : f32
    %385 = vector.broadcast %cst_193 : f32 to vector<2x1xf32>
    %386 = arith.divf %384, %385 : vector<2x1xf32>
    %387 = vector.broadcast %379 : vector<2x1xf32> to vector<2x64xf32>
    %388 = arith.subf %373, %387 : vector<2x64xf32>
    %cst_194 = arith.constant 9.99999974E-6 : f32
    %389 = vector.broadcast %cst_194 : f32 to vector<2x1xf32>
    %390 = arith.addf %386, %389 : vector<2x1xf32>
    %391 = math.rsqrt %390 : vector<2x1xf32>
    %392 = vector.broadcast %391 : vector<2x1xf32> to vector<2x64xf32>
    %393 = arith.mulf %388, %392 : vector<2x64xf32>
    %394 = vector.broadcast %374 : vector<1x64xf32> to vector<2x64xf32>
    %395 = arith.mulf %393, %394 : vector<2x64xf32>
    %396 = vector.broadcast %375 : vector<1x64xf32> to vector<2x64xf32>
    %397 = arith.addf %395, %396 : vector<2x64xf32>
    %c0_195 = arith.constant 0 : index
    %c0_196 = arith.constant 0 : index
    %398 = vector.load %arg22[%c0_195, %c0_196] : memref<64x32xf32, #tpu.memory_space<vmem>>, vector<64x32xf32>
    %cst_197 = arith.constant dense<0.000000e+00> : vector<2x32xf32>
    %399 = tpu.matmul %397, %398, %cst_197 {dimension_numbers = #tpu.dot_dimension_numbers<[1], [0], [0], [1], [0, 0, 1, 1], [], []>} : vector<2x64xf32>, vector<64x32xf32>, vector<2x32xf32> -> vector<2x32xf32>
    %c0_198 = arith.constant 0 : index
    %c0_199 = arith.constant 0 : index
    %400 = vector.load %arg23[%c0_198, %c0_199] : memref<2x32xf32, #tpu.memory_space<vmem>>, vector<2x32xf32>
    tpu.vector_store %arg23[%c0_198, %c0_199], %399 {strides = array<i32>} : memref<2x32xf32, #tpu.memory_space<vmem>>, vector<2x32xf32>,
    return
  }
}

</mosaic_0001>

<bundles_post_ra>
// kernel: text_encoder_forward.1
= control target key start
LH: loop header
LB: loop body
LE: loop exit
PB: predicated region body
PF: predicated region fallthrough
CT: control target
= control target key end

     0   :  { %s6223_s0 = inlined_call_operand.vmem [shape: f32[16,64], index: 0, kind: input, shape index: {}]   ;;  %s6224_s1 = inlined_call_operand.vmem [shape: f32[16,64], index: 1, kind: input, shape index: {}]   ;;  %s6225_s2 = inlined_call_operand.vmem [shape: f32[16,16], index: 2, kind: input, shape index: {}]   ;;  %s6226_s3 = inlined_call_operand.vmem [shape: f32[2,16], index: 3, kind: input, shape index: {}]   ;;  %s6227_s4 = inlined_call_operand.vmem [shape: f32[2,1,64], index: 4, kind: input, shape index: {}]   ;;  %s6228_s5 = inlined_call_operand.vmem [shape: f32[2,1,64], index: 5, kind: input, shape index: {}]   ;;  %s6229_s6 = inlined_call_operand.vmem [shape: f32[2,64,64], index: 6, kind: input, shape index: {}]   ;;  %s6230_s7 = inlined_call_operand.vmem [shape: f32[2,64,64], index: 7, kind: input, shape index: {}]   ;;  %s6231_s8 = inlined_call_operand.vmem [shape: f32[2,64,64], index: 8, kind: input, shape index: {}]   ;;  %s6232_s9 = inlined_call_operand.vmem [shape: f32[2,1,64], index: 9, kind: input, shape index: {}]   ;;  %s6233_s10 = inlined_call_operand.vmem [shape: f32[2,1,64], index: 10, kind: input, shape index: {}]   ;;  %s6234_s11 = inlined_call_operand.vmem [shape: f32[2,1,64], index: 11, kind: input, shape index: {}]   ;;  %s6235_s12 = inlined_call_operand.vmem [shape: f32[2,64,64], index: 12, kind: input, shape index: {}]   ;;  %s6236_s13 = inlined_call_operand.vmem [shape: f32[2,1,64], index: 13, kind: input, shape index: {}]   ;;  %s6237_s14 = inlined_call_operand.vmem [shape: f32[2,1,64], index: 14, kind: input, shape index: {}]   ;;  %s6238_s15 = inlined_call_operand.vmem [shape: f32[2,1,64], index: 15, kind: input, shape index: {}]   ;;  %s6239_s16 = inlined_call_operand.vmem [shape: f32[2,64,256], index: 16, kind: input, shape index: {}]   ;;  %s6240_s17 = inlined_call_operand.vmem [shape: f32[2,1,256], index: 17, kind: input, shape index: {}]   ;;  %s6241_s18 = inlined_call_operand.vmem [shape: f32[2,256,64], index: 18, kind: input, shape index: {}]   ;;  %s6242_s19 = inlined_call_operand.vmem [shape: f32[2,1,64], index: 19, kind: input, shape index: {}]   ;;  %s6243_s20 = inlined_call_operand.vmem [shape: f32[1,64], index: 20, kind: input, shape index: {}]   ;;  %s6244_s21 = inlined_call_operand.vmem [shape: f32[1,64], index: 21, kind: input, shape index: {}]   ;;  %s6245_s22 = inlined_call_operand.vmem [shape: f32[64,32], index: 22, kind: input, shape index: {}]   ;;  %s6246_s23 = inlined_call_operand.hbm [shape: f32[2,32], index: 23, kind: output, shape index: {}]  }
   0x1   :  { %6259 = sst [smem:[#allocation5_spill]] %s6223_s0 }
   0x2   :  { %6260 = sst [smem:[#allocation6_spill]] %s6224_s1 }
   0x3   :  { %6261 = sst [smem:[#allocation7_spill]] %s6225_s2 }
   0x4   :  { %6262 = sst [smem:[#allocation8_spill]] %s6226_s3 }
   0x5   :  { %6263 = sst [smem:[#allocation9_spill]] %s6227_s4 }
   0x6   :  { %6264 = sst [smem:[#allocation10_spill]] %s6228_s5 }
   0x7   :  { %6265 = sst [smem:[#allocation11_spill]] %s6229_s6 }
   0x8   :  { %6266 = sst [smem:[#allocation12_spill]] %s6230_s7 }
   0x9   :  { %6267 = sst [smem:[#allocation13_spill]] %s6240_s17 }
   0xa   :  { %s6268_s24 = sld [smem:[#allocation5_spill]]  ;;  %s6269_s17 = sld [smem:[#allocation6_spill]]  ;;  %vm85_vm0 = vcmask 523264  }
  0x10   :  { %v77_v0 = vld [vmem:[%s6268_s24] sm:$0xff]  ;;  %v78_v2 = vld [vmem:[%s6268_s24 + $0x8] sm:$0xff] }
  0x11   :  { %v79_v1 = vld [vmem:[%s6269_s17] sm:$0xff]  ;;  %v80_v4 = vld [vmem:[%s6269_s17 + $0x8] sm:$0xff] }
  0x12   :  { %v5289_v3 = vadd.f32 %v79_v1, %v77_v0 }
  0x13   :  { %28 = vsyncpa [#allocation3], 0  ;;  %v5294_v5 = vadd.f32 %v80_v4, %v78_v2  ;;  %s6270_s7 = sld [smem:[#allocation11_spill]]  ;;  %s6271_s4 = sld [smem:[#allocation12_spill]]  ;;  %v315_v42 = vld [vmem:[%s6231_s8] sm:$0xff]  ;;  %v316_v43 = vld [vmem:[%s6231_s8 + $0x8] sm:$0xff] }
  0x14   :  { %v86_v6 = vsel %vm85_vm0, %v5289_v3, 0.0  ;;  %v4647_v44 = vpack.c.bf16 %v316_v43, %v315_v42  ;;  %s6272_s1 = sld [smem:[#allocation9_spill]]  ;;  %s6273_s6 = sld [smem:[#allocation10_spill]]  ;;  %v317_v59 = vld [vmem:[%s6231_s8 + $0x10] sm:$0xff]  ;;  %v318_v60 = vld [vmem:[%s6231_s8 + $0x18] sm:$0xff]  ;;  %v319_v0 = vld [vmem:[%s6231_s8 + $0x20] sm:$0xff] }
  0x15   :  { %87 = vadd.xlane.f32.xlu0 %v86_v6  ;;  %v89_v7 = vsel %vm85_vm0, %v5294_v5, 0.0  ;;  %v4651_v63 = vpack.c.bf16 %v318_v60, %v317_v59  ;;  %v320_v1 = vld [vmem:[%s6231_s8 + $0x28] sm:$0xff]  ;;  %v321_v4 = vld [vmem:[%s6231_s8 + $0x30] sm:$0xff]  ;;  %v322_v6 = vld [vmem:[%s6231_s8 + $0x38] sm:$0xff]  ;;  %vm413_vm1 = vcmask 130048   ;;  %s6276_s25 = sld [smem:[#allocation7_spill]] }
  0x16   :  { %v4655_v2 = vpack.c.bf16 %v320_v1, %v319_v0  ;;  %vm5408_vm2 = vmpackc.low %vm413_vm1, %vm413_vm1  ;;  %s5153_s2 = smov 112   ;;  %s6257_s17 = smov 96   ;;  %vm5158_vm3 = vmmov 0   ;;  %vm3738_vm4 = vcmask 517120   ;;  %vm3847_vm5 = vcmask 254976  }
  0x17   :  { %s6255_s27 = smov 80   ;;  %s6277_s30 = sld [smem:[#allocation13_spill]] }
  0x18   :  { %s6280_s29 = sld [smem:[#allocation8_spill]] }
  0x19   :  { %90 = vadd.xlane.f32.xlu0 %v89_v7  ;;  %v129_v18 = vld [vmem:[%s6270_s7] sm:$0xff]  ;;  %v130_v19 = vld [vmem:[%s6270_s7 + $0x8] sm:$0xff]  ;;  %v131_v24 = vld [vmem:[%s6270_s7 + $0x10] sm:$0xff]  ;;  %v4659_v7 = vpack.c.bf16 %v322_v6, %v321_v4 }
  0x1a   :  { %v4615_v20 = vpack.c.bf16 %v130_v19, %v129_v18  ;;  %v225_v21 = vld [vmem:[%s6271_s4] sm:$0xff]  ;;  %v226_v22 = vld [vmem:[%s6271_s4 + $0x8] sm:$0xff]  ;;  %v132_v25 = vld [vmem:[%s6270_s7 + $0x18] sm:$0xff] }
  0x1b   :  { %v4631_v23 = vpack.c.bf16 %v226_v22, %v225_v21  ;;  %v227_v26 = vld [vmem:[%s6271_s4 + $0x10] sm:$0xff]  ;;  %v4619_v27 = vpack.c.bf16 %v132_v25, %v131_v24  ;;  %v228_v28 = vld [vmem:[%s6271_s4 + $0x18] sm:$0xff]  ;;  %v133_v29 = vld [vmem:[%s6270_s7 + $0x20] sm:$0xff] }
  0x1c   :  { %4616 = vmatprep.subr.bf16.mxu0 %v4615_v20  ;;  %v134_v30 = vld [vmem:[%s6270_s7 + $0x28] sm:$0xff]  ;;  %v4635_v31 = vpack.c.bf16 %v228_v28, %v227_v26  ;;  %v229_v33 = vld [vmem:[%s6271_s4 + $0x20] sm:$0xff]  ;;  %v135_v36 = vld [vmem:[%s6270_s7 + $0x30] sm:$0xff] }
  0x1d   :  { %4618 = vmatpush3.bf16.msra.mxu0 %v4615_v20  ;;  %4632 = vmatprep.subr.bf16.mxu1 %v4631_v23  ;;  %v4623_v32 = vpack.c.bf16 %v134_v30, %v133_v29  ;;  %v230_v34 = vld [vmem:[%s6271_s4 + $0x28] sm:$0xff]  ;;  %v136_v37 = vld [vmem:[%s6270_s7 + $0x38] sm:$0xff]  ;;  %v231_v39 = vld [vmem:[%s6271_s4 + $0x30] sm:$0xff] }
  0x1e   :  { %4634 = vmatpush3.bf16.msra.mxu1 %v4631_v23  ;;  %4620 = vmatprep.subr.bf16.mxu0 %v4619_v27  ;;  %v4639_v35 = vpack.c.bf16 %v230_v34, %v229_v33  ;;  %v4627_v38 = vpack.c.bf16 %v136_v37, %v135_v36  ;;  %v232_v40 = vld [vmem:[%s6271_s4 + $0x38] sm:$0xff]  ;;  %v3863_v52 = vld [vmem:[%s6272_s1] ss:$0 sm:$0xff]  ;;  %v5432_v29 = vld [vmem:[%s6276_s25 + $0x8] sm:$0xff] }
  0x1f   :  { %4636 = vmatprep.subr.bf16.mxu1 %v4635_v31  ;;  %v4643_v41 = vpack.c.bf16 %v232_v40, %v231_v39  ;;  %v3864_v54 = vld [vmem:[%s6273_s6] ss:$0 sm:$0xff] }
  0x20   :  { %v3871_v21 = vld [vmem:[%s6234_s11] ss:$0 sm:$0xff] }
  0x21   :  { %4622 = vmatpush3.bf16.msra.mxu0 %v4619_v27 }
  0x22   :  { %4638 = vmatpush3.bf16.msra.mxu1 %v4635_v31  ;;  %4624 = vmatprep.subr.bf16.mxu0 %v4623_v32 }
  0x23   :  { %4640 = vmatprep.subr.bf16.mxu1 %v4639_v35 }
  0x25   :  { %4626 = vmatpush3.bf16.msra.mxu0 %v4623_v32  ;;  %v5437_v32 = vld [vmem:[%s6276_s25] sm:$0xff] }
  0x26   :  { %4642 = vmatpush3.bf16.msra.mxu1 %v4639_v35  ;;  %4628 = vmatprep.subr.bf16.mxu0 %v4627_v38 }
  0x27   :  { %4644 = vmatprep.subr.bf16.mxu1 %v4643_v41 }
  0x29   :  { %4630 = vmatpush3.bf16.msra.mxu0 %v4627_v38 }
  0x2a   :  { %4646 = vmatpush3.bf16.msra.mxu1 %v4643_v41  ;;  %4648 = vmatprep.subr.bf16.mxu0 %v4647_v44 }
  0xa2   :  { %v88_v8 = vpop.xlane.xlu0 %87 }
  0xa3   :  { %v93_v9 = vmul.f32 0.015625, %v88_v8  ;;  %v3868_v8 = vld [vmem:[%s6233_s10] ss:$0 sm:$0xff] }
  0xa5   :  { %v5301_v10 = vsub.f32 %v5289_v3, %v93_v9  ;;  %v3865_v9 = vld [vmem:[%s6232_s9] ss:$0 sm:$0xff] }
  0xa6   :  { %v91_v11 = vpop.xlane.xlu0 %90 }
  0xa7   :  { %v94_v12 = vmul.f32 0.015625, %v91_v11  ;;  %v97_v13 = vmul.f32 %v5301_v10, %v5301_v10 }
  0xa9   :  { %v5306_v14 = vsub.f32 %v5294_v5, %v94_v12  ;;  %v99_v15 = vsel %vm85_vm0, %v97_v13, 0.0 }
  0xaa   :  { %100 = vadd.xlane.f32.xlu1 %v99_v15 }
  0xab   :  { %v98_v16 = vmul.f32 %v5306_v14, %v5306_v14 }
  0xad   :  { %v102_v17 = vsel %vm85_vm0, %v98_v16, 0.0 }
  0xae   :  { %103 = vadd.xlane.f32.xlu1 %v102_v17 }
 0x137   :  { %v101_v45 = vpop.xlane.xlu1 %100 }
 0x138   :  { %v105_v46 = vmul.f32 0.015625, %v101_v45 }
 0x13a   :  { %v107_v47 = vadd.f32 1e-05, %v105_v46 }
 0x13b   :  { %v104_v48 = vpop.xlane.xlu1 %103 }
 0x13c   :  { %5013 = vrsqrt.f32 %v107_v47  ;;  %v106_v49 = vmul.f32 0.015625, %v104_v48 }
 0x13e   :  { %v108_v50 = vadd.f32 1e-05, %v106_v49 }
 0x140   :  { %5015 = vrsqrt.f32 %v108_v50 }
 0x146   :  { %v5014_v51 = vpop.eup %5013 }
 0x147   :  { %v111_v53 = vmul.f32 %v5014_v51, %v5301_v10 }
 0x149   :  { %v119_v55 = vmul.f32 %v3863_v52, %v111_v53 }
 0x14a   :  { %v5016_v56 = vpop.eup %5015 }
 0x14b   :  { %v112_v57 = vmul.f32 %v5016_v56, %v5306_v14  ;;  %v127_v58 = vadd.f32 %v3864_v54, %v119_v55 }
 0x14d   :  { %v120_v61 = vmul.f32 %v3863_v52, %v112_v57  ;;  %4323 = vmatprep.mubr.msk.f32.mxu0 %vm85_vm0, %v127_v58  ;;  %4342 = vmatprep.mubr.msk.f32.mxu1 %vm85_vm0, %v127_v58 }
 0x14f   :  { %v128_v62 = vadd.f32 %v3864_v54, %v120_v61 }
 0x151   :  { %4324 = vmatmul.mubr.msk.f32.vlgmr.msra.gmra.mrb[0].mxu0 %vm85_vm0, %v128_v62  ;;  %4343 = vmatmul.mubr.msk.f32.vlgmr.msra.gmra.mrb[0].mxu1 %vm85_vm0, %v128_v62 }
 0x152   :  { %4650 = vmatpush3.bf16.msra.mxu0 %v4647_v44  ;;  %4361 = vmatprep.mubr.msk.f32.mxu0 %vm85_vm0, %v127_v58 }
 0x153   :  { %4652 = vmatprep.subr.bf16.mxu0 %v4651_v63 }
 0x156   :  { %4654 = vmatpush3.bf16.msra.mxu0 %v4651_v63 }
 0x157   :  { %4656 = vmatprep.subr.bf16.mxu0 %v4655_v2 }
 0x15a   :  { %4658 = vmatpush3.bf16.msra.mxu0 %v4655_v2 }
 0x15b   :  { %4660 = vmatprep.subr.bf16.mxu0 %v4659_v7 }
 0x15e   :  { %4662 = vmatpush3.bf16.msra.mxu0 %v4659_v7 }
 0x161   :  { %4362 = vmatmul.mubr.msk.f32.vlgmr.msra.gmra.mrb[2].mxu0 %vm85_vm0, %v128_v62 }
 0x224   :  { %v4325_v10 = vpop.f32.mrb[0].mxu0  ;;  %v4344_v11 = vpop.f32.mrb[0].mxu1 }
 0x225   :  { %v312_v12 = vadd.f32 %v4344_v11, %v3868_v8  ;;  %v216_v13 = vpop.f32.mrb[1].mxu0  ;;  %v306_v14 = vpop.f32.mrb[1].mxu1  ;;  %v5420_v20 = vadd.f32 %v4325_v10, %v3865_v9 }
 0x226   :  { %v5404_v15 = vadd.f32 %v3865_v9, %v216_v13  ;;  %v307_v16 = vadd.f32 %v3868_v8, %v306_v14 }
 0x228   :  { %4368 = vmatprep.mubr.msk.f32.mxu1 %vm413_vm1, %v5404_v15  ;;  %v4663_v18 = vpack.c.bf16 %v312_v12, %v307_v16  ;;  %v5414_v19 = vpack.i.bf16 %v312_v12, %v307_v16 }
 0x22a   :  { %4665 = vmatprep.subr.msk.bf16.mxu1 %vm5408_vm2, %v4663_v18 }
 0x22b   :  { %4668 = vmatpush3.bf16.xpose.msk.msra.mxu1 %vm5408_vm2, %v4663_v18 }
 0x232   :  { %4369 = vmatmul.mubr.msk.f32.vlgmr.msra.gmra.mrb[2].mxu1 %vm413_vm1, %v5420_v20 }
 0x234   :  { %v4363_v22 = vpop.f32.mrb[2].mxu0 }
 0x235   :  { %v402_v23 = vadd.f32 %v4363_v22, %v3871_v21  ;;  %v396_v24 = vpop.f32.mrb[3].mxu0 }
 0x236   :  { %v397_v25 = vadd.f32 %v3871_v21, %v396_v24 }
 0x238   :  { %v4669_v26 = vpack.c.bf16 %v402_v23, %v397_v25  ;;  %v5427_v27 = vpack.i.bf16 %v402_v23, %v397_v25 }
 0x23a   :  { %4670 = vmatprep.subr.bf16.mxu1 %v4669_v26 }
 0x23b   :  { %4672 = vmatpush3.bf16.msra.mxu1 %v4669_v26 }
 0x305   :  { %v4370_v28 = vpop.f32.mrb[2].mxu1 }
 0x306   :  { %v502_v30 = vmul.f32 0.25, %v4370_v28  ;;  %v492_v31 = vpop.f32.mrb[3].mxu1 }
 0x307   :  { %v501_v33 = vmul.f32 0.25, %v492_v31 }
 0x308   :  { %v504_v34 = vadd.f32 %v502_v30, %v5432_v29 }
 0x309   :  { %v503_v35 = vadd.f32 %v501_v33, %v5437_v32 }
 0x30a   :  { %v508_v36 = vsel %vm413_vm1, %v504_v34, -inf }
 0x30b   :  { %509 = vmax.xlane.f32.xlu1 %v508_v36  ;;  %v505_v37 = vsel %vm413_vm1, %v503_v35, -inf }
 0x30c   :  { %506 = vmax.xlane.f32.xlu0 %v505_v37 }
 0x398   :  { %v510_v38 = vpop.xlane.xlu1 %509 }
 0x399   :  { %v512_v39 = vsub.f32 %v504_v34, %v510_v38  ;;  %v507_v40 = vpop.xlane.xlu0 %506 }
 0x39a   :  { %v511_v41 = vsub.f32 %v503_v35, %v507_v40 }
 0x39b   :  { %v515_v42 = vmul.f32 1.442695, %v512_v39 }
 0x39c   :  { %v513_v43 = vmul.f32 1.442695, %v511_v41 }
 0x39d   :  { %5017 = vpow2.f32 %v515_v42 }
 0x39e   :  { %5019 = vpow2.f32 %v513_v43 }
 0x3a7   :  { %v5018_v44 = vpop.eup %5017 }
 0x3a8   :  { %v5020_v45 = vpop.eup %5019  ;;  %v520_v46 = vsel %vm413_vm1, %v5018_v44, 0.0 }
 0x3a9   :  { %521 = vadd.xlane.f32.xlu1 %v520_v46  ;;  %v517_v47 = vsel %vm413_vm1, %v5020_v45, 0.0 }
 0x3aa   :  { %518 = vadd.xlane.f32.xlu0 %v517_v47 }
 0x3ba   :  { %608 = vrot.lane.b32.xlu1 %v5404_v15, %s5153_s2 }
 0x3be   :  { %610 = vrot.lane.b32.xlu1 %v5420_v20, %s5153_s2 }
 0x3c0   :  { %4954 = vrot.lane.b32.xlu0 %v5414_v19, %s5153_s2 }
 0x3c2   :  { %4959 = vrot.lane.b32.xlu1 %v5414_v19, %s6257_s17 }
 0x3c4   :  { %976 = vrot.lane.b32.xlu0 %v5404_v15, %s6257_s17 }
 0x3c6   :  { %978 = vrot.lane.b32.xlu1 %v5420_v20, %s6257_s17 }
 0x436   :  { %v522_v48 = vpop.xlane.xlu1 %521 }
 0x437   :  { %5021 = vrcp.f32 %v522_v48  ;;  %v519_v49 = vpop.xlane.xlu0 %518 }
 0x438   :  { %5023 = vrcp.f32 %v519_v49 }
 0x43a   :  { %v609_v50 = vpop.permute.xlu1 %608 }
 0x43b   :  { %v4955_v51 = vpop.permute.xlu0 %4954 }
 0x43c   :  { %v4957_v52 = vunpack.i.h.bf16 %v4955_v51  ;;  %v4956_v53 = vunpack.i.l.bf16 %v4955_v51 }
 0x43e   :  { %v4673_v54 = vpack.c.bf16 %v4957_v52, %v4956_v53  ;;  %v611_v55 = vpop.permute.xlu1 %610 }
 0x43f   :  { %v977_v0 = vpop.permute.xlu0 %976 }
 0x440   :  { %4675 = vmatprep.subr.msk.bf16.mxu1 %vm5408_vm2, %v4673_v54 }
 0x441   :  { %v5022_v56 = vpop.eup %5021 }
 0x442   :  { %v5024_v57 = vpop.eup %5023  ;;  %v4960_v58 = vpop.permute.xlu1 %4959  ;;  %v526_v62 = vmul.f32 %v5022_v56, %v5018_v44 }
 0x443   :  { %v4962_v59 = vunpack.i.h.bf16 %v4960_v58  ;;  %v4961_v60 = vunpack.i.l.bf16 %v4960_v58  ;;  %v524_v61 = vmul.f32 %v5024_v57, %v5020_v45 }
 0x445   :  { %v4691_v63 = vpack.c.bf16 %v4962_v59, %v4961_v60  ;;  %4375 = vmatprep.mubr.msk.f32.mxu1 %vm413_vm1, %v524_v61 }
 0x446   :  { %4376 = vmatmul.mubr.msk.f32.vlgmr.msra.gmra.mrb[4].mxu1 %vm413_vm1, %v526_v62  ;;  %v979_v1 = vpop.permute.xlu1 %978 }
 0x447   :  { %4678 = vmatpush3.bf16.xpose.msk.msra.mxu1 %vm5408_vm2, %v4673_v54  ;;  %4382 = vmatprep.mubr.msk.f32.mxu1 %vm413_vm1, %v609_v50 }
 0x448   :  { %4693 = vmatprep.subr.msk.bf16.mxu1 %vm5408_vm2, %v4691_v63 }
 0x44e   :  { %4383 = vmatmul.mubr.msk.f32.vlgmr.msra.gmra.mrb[6].mxu1 %vm413_vm1, %v611_v55 }
 0x44f   :  { %4696 = vmatpush3.bf16.xpose.msk.msra.mxu1 %vm5408_vm2, %v4691_v63  ;;  %4410 = vmatprep.mubr.msk.f32.mxu1 %vm413_vm1, %v977_v0 }
 0x456   :  { %4411 = vmatmul.mubr.msk.f32.vlgmr.msra.gmra.mrb[8].mxu1 %vm413_vm1, %v979_v1 }
 0x519   :  { %v5471_v2 = vpop.f32.mrb[4].mxu1 }
 0x51a   :  { %v5473_v4 = vpop.f32.mrb[5].mxu1 }
 0x521   :  { %v4384_v6 = vpop.f32.mrb[6].mxu1 }
 0x522   :  { %v700_v7 = vmul.f32 0.25, %v4384_v6  ;;  %v690_v8 = vpop.f32.mrb[7].mxu1 }
 0x523   :  { %v699_v9 = vmul.f32 0.25, %v690_v8 }
 0x524   :  { %v702_v10 = vadd.f32 %v700_v7, %v5432_v29 }
 0x525   :  { %v701_v11 = vadd.f32 %v699_v9, %v5437_v32 }
 0x526   :  { %v706_v12 = vsel %vm413_vm1, %v702_v10, -inf }
 0x527   :  { %707 = vmax.xlane.f32.xlu1 %v706_v12  ;;  %v703_v13 = vsel %vm413_vm1, %v701_v11, -inf  ;;  %v406_v12 = vld [vmem:[%s6235_s12 + $0x8] sm:$0xff] }
 0x528   :  { %704 = vmax.xlane.f32.xlu0 %v703_v13 }
 0x529   :  { %v4412_v14 = vpop.f32.mrb[8].mxu1 }
 0x52a   :  { %v1058_v16 = vpop.f32.mrb[9].mxu1  ;;  %v1068_v18 = vmul.f32 0.25, %v4412_v14 }
 0x52b   :  { %v1067_v42 = vmul.f32 0.25, %v1058_v16 }
 0x52c   :  { %v1070_v21 = vadd.f32 %v1068_v18, %v5432_v29 }
 0x52d   :  { %v1069_v43 = vadd.f32 %v1067_v42, %v5437_v32 }
 0x52e   :  { %v1074_v22 = vsel %vm413_vm1, %v1070_v21, -inf }
 0x52f   :  { %v1071_v44 = vsel %vm413_vm1, %v1069_v43, -inf }
 0x538   :  { %4969 = vrot.lane.b32.xlu1 %v5414_v19, %s6255_s27 }
 0x53c   :  { %1263 = vrot.lane.b32.xlu1 %v5404_v15, %s6255_s27 }
 0x540   :  { %1265 = vrot.lane.b32.xlu1 %v5420_v20, %s6255_s27 }
 0x564   :  { %1075 = vmax.xlane.f32.xlu1 %v1074_v22 }
 0x5b4   :  { %v708_v23 = vpop.xlane.xlu1 %707 }
 0x5b5   :  { %v710_v24 = vsub.f32 %v702_v10, %v708_v23  ;;  %v705_v25 = vpop.xlane.xlu0 %704  ;;  %v407_v10 = vld [vmem:[%s6235_s12 + $0x10] sm:$0xff] }
 0x5b6   :  { %v709_v26 = vsub.f32 %v701_v11, %v705_v25  ;;  %v408_v11 = vld [vmem:[%s6235_s12 + $0x18] sm:$0xff] }
 0x5b7   :  { %v713_v28 = vmul.f32 1.442695, %v710_v24 }
 0x5b8   :  { %v711_v30 = vmul.f32 1.442695, %v709_v26  ;;  %v4970_v31 = vpop.permute.xlu1 %4969 }
 0x5b9   :  { %5025 = vpow2.f32 %v713_v28  ;;  %v4972_v19 = vunpack.i.h.bf16 %v4970_v31  ;;  %v4971_v33 = vunpack.i.l.bf16 %v4970_v31 }
 0x5ba   :  { %5027 = vpow2.f32 %v711_v30 }
 0x5bb   :  { %v4705_v15 = vpack.c.bf16 %v4972_v19, %v4971_v33 }
 0x5bc   :  { %v1264_v34 = vpop.permute.xlu1 %1263 }
 0x5bd   :  { %4707 = vmatprep.subr.msk.bf16.mxu1 %vm5408_vm2, %v4705_v15  ;;  %4431 = vmatprep.mubr.msk.f32.mxu1 %vm413_vm1, %v1264_v34 }
 0x5be   :  { %4710 = vmatpush3.bf16.xpose.msk.msra.mxu1 %vm5408_vm2, %v4705_v15 }
 0x5c0   :  { %v1266_v35 = vpop.permute.xlu1 %1265 }
 0x5c3   :  { %v5026_v20 = vpop.eup %5025 }
 0x5c4   :  { %v718_v36 = vsel %vm413_vm1, %v5026_v20, 0.0  ;;  %v5028_v37 = vpop.eup %5027 }
 0x5c5   :  { %4432 = vmatmul.mubr.msk.f32.vlgmr.msra.gmra.mrb[10].mxu1 %vm413_vm1, %v1266_v35  ;;  %719 = vadd.xlane.f32.xlu0 %v718_v36  ;;  %v715_v38 = vsel %vm413_vm1, %v5028_v37, 0.0 }
 0x5c9   :  { %716 = vadd.xlane.f32.xlu0 %v715_v38 }
 0x5df   :  { %4964 = vrot.lane.b32.xlu0 %v5427_v27, %s5153_s2 }
 0x5f1   :  { %v1076_v39 = vpop.xlane.xlu1 %1075 }
 0x5f2   :  { %v1078_v40 = vsub.f32 %v1070_v21, %v1076_v39 }
 0x5f4   :  { %v1081_v41 = vmul.f32 1.442695, %v1078_v40 }
 0x5f6   :  { %5029 = vpow2.f32 %v1081_v41 }
 0x5fe   :  { %1072 = vmax.xlane.f32.xlu0 %v1071_v44 }
 0x600   :  { %v5499_v45 = vpop.eup %5029 }
 0x601   :  { %v1086_v46 = vsel %vm413_vm1, %v5499_v45, 0.0 }
 0x602   :  { %1087 = vadd.xlane.f32.xlu0 %v1086_v46 }
 0x652   :  { %v720_v47 = vpop.xlane.xlu0 %719 }
 0x653   :  { %5031 = vrcp.f32 %v720_v47  ;;  %v412_v47 = vld [vmem:[%s6235_s12 + $0x38] sm:$0xff] }
 0x656   :  { %v717_v48 = vpop.xlane.xlu0 %716 }
 0x657   :  { %5033 = vrcp.f32 %v717_v48 }
 0x65a   :  { %v4965_v49 = vpop.permute.xlu0 %4964 }
 0x65b   :  { %v4967_v50 = vunpack.i.h.bf16 %v4965_v49  ;;  %v4966_v51 = vunpack.i.l.bf16 %v4965_v49 }
 0x65d   :  { %v4679_v52 = vpack.c.bf16 %v4967_v50, %v4966_v51  ;;  %v5032_v53 = vpop.eup %5031 }
 0x65e   :  { %v724_v56 = vmul.f32 %v5032_v53, %v5026_v20 }
 0x65f   :  { %4680 = vmatprep.subr.bf16.mxu0 %v4679_v52 }
 0x660   :  { %4682 = vmatpush3.bf16.msra.mxu0 %v4679_v52 }
 0x661   :  { %v5034_v54 = vpop.eup %5033 }
 0x662   :  { %v722_v55 = vmul.f32 %v5034_v54, %v5028_v37 }
 0x664   :  { %4389 = vmatprep.mubr.msk.f32.mxu0 %vm413_vm1, %v722_v55 }
 0x665   :  { %4390 = vmatmul.mubr.msk.f32.vlgmr.msra.gmra.mrb[4].mxu0 %vm413_vm1, %v724_v56 }
 0x68b   :  { %v1073_v57 = vpop.xlane.xlu0 %1072 }
 0x68c   :  { %v1077_v58 = vsub.f32 %v1069_v43, %v1073_v57 }
 0x68e   :  { %v1079_v59 = vmul.f32 1.442695, %v1077_v58  ;;  %v3906_v58 = vld [vmem:[%s6236_s13] ss:$0 sm:$0xff] }
 0x68f   :  { %v1088_v14 = vpop.xlane.xlu0 %1087 }
 0x690   :  { %5035 = vpow2.f32 %v1079_v59 }
 0x698   :  { %v4433_v60 = vpop.f32.mrb[10].mxu1 }
 0x699   :  { %v1345_v61 = vpop.f32.mrb[11].mxu1  ;;  %v1355_v63 = vmul.f32 0.25, %v4433_v60 }
 0x69a   :  { %v5036_v62 = vpop.eup %5035  ;;  %v1354_v0 = vmul.f32 0.25, %v1345_v61 }
 0x69b   :  { %v1083_v1 = vsel %vm413_vm1, %v5036_v62, 0.0  ;;  %v1357_v8 = vadd.f32 %v1355_v63, %v5432_v29  ;;  %v405_v29 = vld [vmem:[%s6235_s12] sm:$0xff] }
 0x69c   :  { %1084 = vadd.xlane.f32.xlu0 %v1083_v1  ;;  %v1356_v6 = vadd.f32 %v1354_v0, %v5437_v32  ;;  %v4683_v32 = vpack.c.bf16 %v408_v11, %v407_v10  ;;  %v4687_v13 = vpack.c.bf16 %v406_v12, %v405_v29  ;;  %v1606_v12 = vld [vmem:[%s6239_s16 + $0x8] sm:$0xff] }
 0x69d   :  { %v1361_v9 = vsel %vm413_vm1, %v1357_v8, -inf }
 0x69e   :  { %v1358_v7 = vsel %vm413_vm1, %v1356_v6, -inf  ;;  %4684 = vmatprep.subr.bf16.mxu0 %v4683_v32 }
 0x69f   :  { %1359 = vmax.xlane.f32.xlu1 %v1358_v7  ;;  %4686 = vmatpush3.bf16.msra.mxu0 %v4683_v32 }
 0x6a0   :  { %4688 = vmatprep.subr.bf16.mxu0 %v4687_v13 }
 0x6a3   :  { %1362 = vmax.xlane.f32.xlu1 %v1361_v9 }
 0x6b2   :  { %4974 = vrot.lane.b32.xlu0 %v5427_v27, %s6257_s17 }
 0x729   :  { %v1085_v18 = vpop.xlane.xlu0 %1084 }
 0x72a   :  { %5037 = vrcp.f32 %v1085_v18  ;;  %v1607_v18 = vld [vmem:[%s6239_s16 + $0x10] sm:$0xff] }
 0x72c   :  { %v1360_v16 = vpop.xlane.xlu1 %1359 }
 0x72d   :  { %v1364_v21 = vsub.f32 %v1356_v6, %v1360_v16  ;;  %v4975_v26 = vpop.permute.xlu0 %4974  ;;  %v1605_v16 = vld [vmem:[%s6239_s16] sm:$0xff] }
 0x72e   :  { %v4977_v28 = vunpack.i.h.bf16 %v4975_v26  ;;  %v4976_v30 = vunpack.i.l.bf16 %v4975_v26  ;;  %v1611_v26 = vld [vmem:[%s6239_s16 + $0x30] sm:$0xff] }
 0x72f   :  { %v1366_v24 = vmul.f32 1.442695, %v1364_v21  ;;  %v4721_v21 = vpack.c.bf16 %v1607_v18, %v1605_v16  ;;  %v1772_v18 = vld [vmem:[%s6241_s18 + $0xc0] sm:$0xff] }
 0x730   :  { %v1363_v22 = vpop.xlane.xlu1 %1362  ;;  %v4697_v33 = vpack.c.bf16 %v4977_v28, %v4976_v30  ;;  %v1614_v30 = vld [vmem:[%s6239_s16 + $0x48] sm:$0xff] }
 0x731   :  { %v1365_v23 = vsub.f32 %v1357_v8, %v1363_v22  ;;  %v1610_v22 = vld [vmem:[%s6239_s16 + $0x28] sm:$0xff] }
 0x733   :  { %v1368_v25 = vmul.f32 1.442695, %v1365_v23  ;;  %v1612_v23 = vld [vmem:[%s6239_s16 + $0x38] sm:$0xff] }
 0x734   :  { %v5038_v15 = vpop.eup %5037 }
 0x735   :  { %5039 = vpow2.f32 %v1368_v25  ;;  %v1090_v37 = vmul.f32 %v5038_v15, %v5036_v62  ;;  %v1609_v25 = vld [vmem:[%s6239_s16 + $0x20] sm:$0xff]  ;;  %v1615_v15 = vld [vmem:[%s6239_s16 + $0x50] sm:$0xff] }
 0x736   :  { %5041 = vpow2.f32 %v1366_v24  ;;  %v4723_v24 = vpack.c.bf16 %v1612_v23, %v1610_v22  ;;  %v4725_v28 = vpack.c.bf16 %v1611_v26, %v1609_v25  ;;  %v1756_v23 = vld [vmem:[%s6241_s18 + $0x40] sm:$0xff]  ;;  %v1774_v26 = vld [vmem:[%s6241_s18 + $0xd0] sm:$0xff] }
 0x737   :  { %5043 = vrcp.f32 %v1088_v14 }
 0x738   :  { %v4391_v31 = vpop.f32.mrb[4].mxu0 }
 0x739   :  { %v805_v19 = vpop.f32.mrb[5].mxu0 }
 0x73a   :  { %4396 = vmatprep.mubr.msk.f32.mxu0 %vm413_vm1, %v805_v19 }
 0x73b   :  { %4397 = vmatmul.mubr.msk.f32.vlgmr.msra.gmra.mrb[6].mxu0 %vm413_vm1, %v4391_v31  ;;  %v1616_v31 = vld [vmem:[%s6239_s16 + $0x58] sm:$0xff] }
 0x73c   :  { %4690 = vmatpush3.bf16.msra.mxu0 %v4687_v13  ;;  %4403 = vmatprep.mubr.msk.f32.mxu0 %vm413_vm1, %v5473_v4  ;;  %v409_v4 = vld [vmem:[%s6235_s12 + $0x20] sm:$0xff]  ;;  %v1608_v13 = vld [vmem:[%s6239_s16 + $0x18] sm:$0xff]  ;;  %v4727_v19 = vpack.c.bf16 %v1616_v31, %v1614_v30  ;;  %v1758_v31 = vld [vmem:[%s6241_s18 + $0x50] sm:$0xff] }
 0x73d   :  { %4698 = vmatprep.subr.bf16.mxu0 %v4697_v33  ;;  %v4719_v14 = vpack.c.bf16 %v1608_v13, %v1606_v12  ;;  %v1754_v13 = vld [vmem:[%s6241_s18 + $0x30] sm:$0xff] }
 0x73f   :  { %v5040_v34 = vpop.eup %5039  ;;  %4720 = vmatprep.subr.bf16.mxu1 %v4719_v14  ;;  %v1755_v14 = vld [vmem:[%s6241_s18 + $0x38] sm:$0xff] }
 0x740   :  { %v1373_v20 = vsel %vm413_vm1, %v5040_v34, 0.0  ;;  %v5042_v35 = vpop.eup %5041  ;;  %4722 = vmatpush1.bf16.msra.mxu1 %v4721_v21  ;;  %v4749_v16 = vpack.c.bf16 %v1755_v14, %v1754_v13  ;;  %v1773_v21 = vld [vmem:[%s6241_s18 + $0xc8] sm:$0xff] }
 0x741   :  { %1374 = vadd.xlane.f32.xlu1 %v1373_v20  ;;  %v5044_v36 = vpop.eup %5043  ;;  %v1370_v38 = vsel %vm413_vm1, %v5042_v35, 0.0  ;;  %4724 = vmatprep.subr.bf16.mxu1 %v4723_v24  ;;  %v1618_v20 = vld [vmem:[%s6239_s16 + $0x68] sm:$0xff]  ;;  %v4751_v22 = vpack.c.bf16 %v1773_v21, %v1772_v18 }
 0x742   :  { %v1092_v39 = vmul.f32 %v5044_v36, %v5499_v45  ;;  %v1617_v36 = vld [vmem:[%s6239_s16 + $0x60] sm:$0xff]  ;;  %v1757_v24 = vld [vmem:[%s6241_s18 + $0x48] sm:$0xff] }
 0x743   :  { %4404 = vmatmul.mubr.msk.f32.vlgmr.msra.gmra.mrb[6].mxu0 %vm413_vm1, %v5471_v2  ;;  %v410_v2 = vld [vmem:[%s6235_s12 + $0x28] sm:$0xff]  ;;  %v4753_v25 = vpack.c.bf16 %v1757_v24, %v1756_v23 }
 0x744   :  { %4700 = vmatpush3.bf16.msra.mxu0 %v4697_v33  ;;  %4417 = vmatprep.mubr.msk.f32.mxu0 %vm413_vm1, %v1090_v37  ;;  %v4701_v40 = vpack.c.bf16 %v410_v2, %v409_v4  ;;  %v1613_v33 = vld [vmem:[%s6239_s16 + $0x40] sm:$0xff] }
 0x745   :  { %1371 = vadd.xlane.f32.xlu1 %v1370_v38  ;;  %4726 = vmatpush1.bf16.msra.mxu1 %v4725_v28  ;;  %v1619_v38 = vld [vmem:[%s6239_s16 + $0x70] sm:$0xff]  ;;  %v1775_v28 = vld [vmem:[%s6241_s18 + $0xd8] sm:$0xff] }
 0x746   :  { %4702 = vmatprep.subr.bf16.mxu0 %v4701_v40  ;;  %4728 = vmatprep.subr.bf16.mxu1 %v4727_v19  ;;  %v4733_v4 = vpack.c.bf16 %v1619_v38, %v1617_v36  ;;  %v4755_v30 = vpack.c.bf16 %v1775_v28, %v1774_v26  ;;  %v1759_v19 = vld [vmem:[%s6241_s18 + $0x58] sm:$0xff]  ;;  %v1761_v36 = vld [vmem:[%s6241_s18 + $0x68] sm:$0xff]  ;;  %v1778_v38 = vld [vmem:[%s6241_s18 + $0xf0] sm:$0xff] }
 0x747   :  { %4418 = vmatmul.mubr.msk.f32.vlgmr.msra.gmra.mrb[8].mxu0 %vm413_vm1, %v1092_v39  ;;  %v5156_v39 = vmov 0.0   ;;  %v3915_v26 = vld [vmem:[%s6242_s19] ss:$0 sm:$0xff] }
 0x748   :  { %4704 = vmatpush3.bf16.msra.mxu0 %v4701_v40  ;;  %1703 = vmatprep.mubr.f32.mxu1 %v5156_v39 }
 0x756   :  { %4979 = vrot.lane.b32.xlu1 %v5427_v27, %s6255_s27  ;;  %v411_v27 = vld [vmem:[%s6235_s12 + $0x30] sm:$0xff] }
 0x757   :  { %v4715_v51 = vpack.c.bf16 %v412_v47, %v411_v27  ;;  %v3908_v47 = vld [vmem:[%s6238_s15] ss:$0 sm:$0xff] }
 0x7ce   :  { %v1375_v41 = vpop.xlane.xlu1 %1374 }
 0x7d2   :  { %v1372_v42 = vpop.xlane.xlu1 %1371 }
 0x7d3   :  { %5045 = vrcp.f32 %v1372_v42 }
 0x7d4   :  { %5047 = vrcp.f32 %v1375_v41 }
 0x7d6   :  { %v4980_v43 = vpop.permute.xlu1 %4979 }
 0x7d7   :  { %v4982_v44 = vunpack.i.h.bf16 %v4980_v43  ;;  %v4981_v45 = vunpack.i.l.bf16 %v4980_v43 }
 0x7d9   :  { %v4711_v46 = vpack.c.bf16 %v4982_v44, %v4981_v45 }
 0x7db   :  { %4712 = vmatprep.subr.bf16.mxu0 %v4711_v46 }
 0x7dd   :  { %v5046_v48 = vpop.eup %5045 }
 0x7de   :  { %v5048_v52 = vpop.eup %5047  ;;  %v1377_v53 = vmul.f32 %v5046_v48, %v5042_v35  ;;  %v1620_v35 = vld [vmem:[%s6239_s16 + $0x78] sm:$0xff] }
 0x7df   :  { %v1379_v54 = vmul.f32 %v5048_v52, %v5040_v34  ;;  %v4729_v34 = vpack.c.bf16 %v1615_v15, %v1613_v33  ;;  %v4731_v37 = vpack.c.bf16 %v1620_v35, %v1618_v20  ;;  %v4757_v33 = vpack.c.bf16 %v1759_v19, %v1758_v31  ;;  %v1776_v15 = vld [vmem:[%s6241_s18 + $0xe0] sm:$0xff] }
 0x7e0   :  { %v1760_v35 = vld [vmem:[%s6241_s18 + $0x60] sm:$0xff] }
 0x7e1   :  { %4730 = vmatpush1.bf16.msra.mxu1 %v4729_v34  ;;  %v1777_v34 = vld [vmem:[%s6241_s18 + $0xe8] sm:$0xff] }
 0x7e2   :  { %4732 = vmatprep.subr.bf16.mxu1 %v4731_v37  ;;  %v4759_v20 = vpack.c.bf16 %v1777_v34, %v1776_v15  ;;  %v4761_v37 = vpack.c.bf16 %v1761_v36, %v1760_v35 }
 0x7e5   :  { %4734 = vmatpush1.bf16.msra.mxu1 %v4733_v4  ;;  %v1779_v4 = vld [vmem:[%s6241_s18 + $0xf8] sm:$0xff] }
 0x81a   :  { %v4419_v49 = vpop.f32.mrb[8].mxu0 }
 0x81b   :  { %v1171_v50 = vpop.f32.mrb[9].mxu0 }
 0x81c   :  { %4424 = vmatprep.mubr.msk.f32.mxu0 %vm413_vm1, %v1171_v50 }
 0x81d   :  { %4425 = vmatmul.mubr.msk.f32.vlgmr.msra.gmra.mrb[6].mxu0 %vm413_vm1, %v4419_v49 }
 0x81e   :  { %4714 = vmatpush3.bf16.msra.mxu0 %v4711_v46  ;;  %4438 = vmatprep.mubr.msk.f32.mxu0 %vm413_vm1, %v1377_v53  ;;  %v3907_v46 = vld [vmem:[%s6237_s14] ss:$0 sm:$0xff] }
 0x81f   :  { %4716 = vmatprep.subr.bf16.mxu0 %v4715_v51 }
 0x821   :  { %4439 = vmatmul.mubr.msk.f32.vlgmr.msra.gmra.mrb[10].mxu0 %vm413_vm1, %v1379_v54  ;;  %v1764_v54 = vld [vmem:[%s6241_s18 + $0x80] sm:$0xff] }
 0x822   :  { %4718 = vmatpush3.bf16.msra.mxu0 %v4715_v51 }
 0x8f4   :  { %v4440_v55 = vpop.f32.mrb[10].mxu0 }
 0x8f5   :  { %v1458_v56 = vpop.f32.mrb[11].mxu0 }
 0x8f6   :  { %4445 = vmatprep.mubr.msk.f32.mxu0 %vm413_vm1, %v1458_v56 }
 0x8f7   :  { %4446 = vmatmul.mubr.msk.f32.vlgmr.msra.gmra.mrb[6].mxu0 %vm413_vm1, %v4440_v55  ;;  %v1765_v55 = vld [vmem:[%s6241_s18 + $0x88] sm:$0xff] }
 0x8f8   :  { %v4735_v56 = vpack.c.bf16 %v1765_v55, %v1764_v54 }
 0x8fa   :  { %4736 = vmatprep.subr.bf16.mxu0 %v4735_v56 }
 0x9ca   :  { %v4447_v57 = vpop.f32.mrb[6].mxu0 }
 0x9cb   :  { %v1551_v59 = vadd.f32 %v4447_v57, %v5294_v5  ;;  %v1539_v60 = vpop.f32.mrb[7].mxu0  ;;  %v1748_v57 = vld [vmem:[%s6241_s18] sm:$0xff] }
 0x9cc   :  { %v1550_v61 = vadd.f32 %v1539_v60, %v5289_v3  ;;  %v1766_v60 = vld [vmem:[%s6241_s18 + $0x90] sm:$0xff] }
 0x9cd   :  { %v5560_v62 = vadd.f32 %v3906_v58, %v1551_v59 }
 0x9ce   :  { %v5562_v63 = vadd.f32 %v3906_v58, %v1550_v61  ;;  %v1749_v58 = vld [vmem:[%s6241_s18 + $0x8] sm:$0xff]  ;;  %v1767_v61 = vld [vmem:[%s6241_s18 + $0x98] sm:$0xff] }
 0x9cf   :  { %v1566_v0 = vsel %vm85_vm0, %v5560_v62, 0.0  ;;  %v4737_v59 = vpack.c.bf16 %v1749_v58, %v1748_v57 }
 0x9d0   :  { %1567 = vadd.xlane.f32.xlu1 %v1566_v0  ;;  %v1563_v1 = vsel %vm85_vm0, %v5562_v63, 0.0  ;;  %v4739_v0 = vpack.c.bf16 %v1767_v61, %v1766_v60 }
 0x9d1   :  { %1564 = vadd.xlane.f32.xlu0 %v1563_v1  ;;  %4738 = vmatpush3.bf16.msra.mxu0 %v4737_v59  ;;  %v1750_v1 = vld [vmem:[%s6241_s18 + $0x10] sm:$0xff] }
 0x9d2   :  { %4740 = vmatprep.subr.bf16.mxu0 %v4739_v0 }
 0xa5d   :  { %v1568_v6 = vpop.xlane.xlu1 %1567 }
 0xa5e   :  { %v1570_v7 = vmul.f32 0.015625, %v1568_v6  ;;  %v1565_v8 = vpop.xlane.xlu0 %1564  ;;  %v1751_v6 = vld [vmem:[%s6241_s18 + $0x18] sm:$0xff] }
 0xa5f   :  { %v1569_v9 = vmul.f32 0.015625, %v1565_v8  ;;  %v1768_v8 = vld [vmem:[%s6241_s18 + $0xa0] sm:$0xff] }
 0xa60   :  { %v1572_v5 = vsub.f32 %v5560_v62, %v1570_v7  ;;  %v4741_v7 = vpack.c.bf16 %v1751_v6, %v1750_v1 }
 0xa61   :  { %v1571_v3 = vsub.f32 %v5562_v63, %v1569_v9  ;;  %v1769_v9 = vld [vmem:[%s6241_s18 + $0xa8] sm:$0xff] }
 0xa62   :  { %v1574_v32 = vmul.f32 %v1572_v5, %v1572_v5  ;;  %4742 = vmatpush3.bf16.msra.mxu0 %v4741_v7 }
 0xa63   :  { %v1573_v10 = vmul.f32 %v1571_v3, %v1571_v3 }
 0xa64   :  { %v1578_v29 = vsel %vm85_vm0, %v1574_v32, 0.0  ;;  %v1770_v32 = vld [vmem:[%s6241_s18 + $0xb0] sm:$0xff] }
 0xa65   :  { %v1575_v11 = vsel %vm85_vm0, %v1573_v10, 0.0  ;;  %v1753_v10 = vld [vmem:[%s6241_s18 + $0x28] sm:$0xff] }
 0xa66   :  { %1576 = vadd.xlane.f32.xlu0 %v1575_v11 }
 0xa6a   :  { %1579 = vadd.xlane.f32.xlu0 %v1578_v29  ;;  %v1771_v29 = vld [vmem:[%s6241_s18 + $0xb8] sm:$0xff] }
 0xa6b   :  { %v4747_v12 = vpack.c.bf16 %v1771_v29, %v1770_v32 }
 0xaf3   :  { %v1577_v2 = vpop.xlane.xlu0 %1576 }
 0xaf4   :  { %v1581_v40 = vmul.f32 0.015625, %v1577_v2  ;;  %v4763_v2 = vpack.c.bf16 %v1779_v4, %v1778_v38 }
 0xaf6   :  { %v1583_v41 = vadd.f32 1e-05, %v1581_v40  ;;  %v1762_v40 = vld [vmem:[%s6241_s18 + $0x70] sm:$0xff] }
 0xaf7   :  { %v1580_v42 = vpop.xlane.xlu0 %1579 }
 0xaf8   :  { %5049 = vrsqrt.f32 %v1583_v41  ;;  %v1582_v43 = vmul.f32 0.015625, %v1580_v42  ;;  %v1763_v41 = vld [vmem:[%s6241_s18 + $0x78] sm:$0xff] }
 0xaf9   :  { %v4765_v42 = vpack.c.bf16 %v1763_v41, %v1762_v40 }
 0xafa   :  { %v1584_v44 = vadd.f32 1e-05, %v1582_v43  ;;  %v1623_v43 = vlaneseq }
 0xafc   :  { %5051 = vrsqrt.f32 %v1584_v44  ;;  %v5726_v44 = vshrl.u32 %v1623_v43, 7  ;;  %v3920_v43 = vld [vmem:[%s6270_s7 + $0x40] sm:$0xff] }
 0xb02   :  { %v5050_v45 = vpop.eup %5049 }
 0xb03   :  { %v1587_v27 = vmul.f32 %v5050_v45, %v1571_v3  ;;  %v1752_v3 = vld [vmem:[%s6241_s18 + $0x20] sm:$0xff]  ;;  %v1625_v45 = vsub.s32 0, %v5726_v44 }
 0xb04   :  { %v4745_v11 = vpack.c.bf16 %v1753_v10, %v1752_v3 }
 0xb05   :  { %v1595_v48 = vmul.f32 %v3907_v46, %v1587_v27  ;;  %v1629_v27 = vsub.s32 1, %v5726_v44 }
 0xb06   :  { %v5052_v49 = vpop.eup %5051 }
 0xb07   :  { %v1603_v50 = vadd.f32 %v3908_v47, %v1595_v48  ;;  %v1588_v51 = vmul.f32 %v5052_v49, %v1572_v5  ;;  %v4743_v5 = vpack.c.bf16 %v1769_v9, %v1768_v8 }
 0xb09   :  { %3909 = vmatmul.mubr.msk.f32.vlgmr.msra.gmra.mrb[12].mxu1 %vm85_vm0, %v1603_v50  ;;  %v1596_v52 = vmul.f32 %v3907_v46, %v1588_v51  ;;  %4744 = vmatprep.subr.bf16.mxu0 %v4743_v5  ;;  %v1621_v46 = vld [vmem:[%s6277_s30] sm:$0x3] }
 0xb0a   :  { %1709 = vmatprep.mubr.f32.mxu1 %v5156_v39  ;;  %4746 = vmatpush3.bf16.msra.mxu0 %v4745_v11  ;;  %v1630_v48 = vrot.slane %v1621_v46, %v1629_v27 }
 0xb0b   :  { %v1604_v53 = vadd.f32 %v3908_v47, %v1596_v52  ;;  %4748 = vmatprep.subr.bf16.mxu0 %v4747_v12  ;;  %v1626_v47 = vrot.slane %v1621_v46, %v1625_v45  ;;  %v3921_v46 = vld [vmem:[%s6270_s7 + $0x48] sm:$0xff] }
 0xb0d   :  { %3910 = vmatmul.mubr.msk.f32.gmra.mrb[14].mxu1 %vm85_vm0, %v1604_v53 }
 0xb0e   :  { %4750 = vmatpush3.bf16.msra.mxu0 %v4749_v16 }
 0xb0f   :  { %4752 = vmatprep.subr.bf16.mxu0 %v4751_v22 }
 0xb12   :  { %4754 = vmatpush3.bf16.msra.mxu0 %v4753_v25 }
 0xb13   :  { %4756 = vmatprep.subr.bf16.mxu0 %v4755_v30 }
 0xb16   :  { %4758 = vmatpush3.bf16.msra.mxu0 %v4757_v33 }
 0xb17   :  { %4760 = vmatprep.subr.bf16.mxu0 %v4759_v20 }
 0xb1a   :  { %4762 = vmatpush3.bf16.msra.mxu0 %v4761_v37 }
 0xb1b   :  { %4764 = vmatprep.subr.bf16.mxu0 %v4763_v2 }
 0xb1e   :  { %4766 = vmatpush3.bf16.msra.mxu0 %v4765_v42 }
 0xbdc   :  { %v1705_v49 = vpop.f32.mrb[12].mxu1 }
 0xbdd   :  { %v1706_v50 = vadd.f32 %v1705_v49, %v1626_v47  ;;  %v1707_v51 = vpop.f32.mrb[13].mxu1  ;;  %v3945_v49 = vld [vmem:[%s6231_s8 + $0x48] sm:$0xff] }
 0xbde   :  { %v1708_v52 = vadd.f32 %v1707_v51, %v1630_v48  ;;  %v3922_v51 = vld [vmem:[%s6270_s7 + $0x50] sm:$0xff] }
 0xbdf   :  { %v3911_v53 = vmul.f32 -1.702, %v1706_v50 }
 0xbe0   :  { %v3912_v54 = vmul.f32 -1.702, %v1708_v52  ;;  %v1711_v55 = vpop.f32.mrb[14].mxu1 }
 0xbe1   :  { %v1724_v56 = vmul.f32 1.442695, %v3911_v53  ;;  %v1712_v57 = vadd.f32 %v1711_v55, %v1626_v47  ;;  %v1713_v58 = vpop.f32.mrb[15].mxu1  ;;  %v4767_v47 = vpack.c.bf16 %v3921_v46, %v3920_v43  ;;  %v3947_v55 = vld [vmem:[%s6231_s8 + $0x58] sm:$0xff] }
 0xbe2   :  { %v1726_v59 = vmul.f32 1.442695, %v3912_v54  ;;  %v1714_v60 = vadd.f32 %v1713_v58, %v1630_v48  ;;  %v3944_v48 = vld [vmem:[%s6231_s8 + $0x40] sm:$0xff]  ;;  %v3946_v54 = vld [vmem:[%s6231_s8 + $0x50] sm:$0xff]  ;;  %v3925_v58 = vld [vmem:[%s6270_s7 + $0x68] sm:$0xff] }
 0xbe3   :  { %5053 = vpow2.f32 %v1724_v56  ;;  %v3913_v61 = vmul.f32 -1.702, %v1712_v57  ;;  %4768 = vmatprep.subr.bf16.mxu1 %v4767_v47  ;;  %v4803_v56 = vpack.c.bf16 %v3947_v55, %v3946_v54 }
 0xbe4   :  { %5055 = vpow2.f32 %v1726_v59  ;;  %v3914_v0 = vmul.f32 -1.702, %v1714_v60  ;;  %4770 = vmatpush3.bf16.msra.mxu1 %v4767_v47 }
 0xbe5   :  { %v1728_v1 = vmul.f32 1.442695, %v3913_v61  ;;  %v3949_v61 = vld [vmem:[%s6231_s8 + $0x68] sm:$0xff] }
 0xbe6   :  { %v1730_v6 = vmul.f32 1.442695, %v3914_v0 }
 0xbe7   :  { %5057 = vpow2.f32 %v1728_v1  ;;  %v3926_v1 = vld [vmem:[%s6270_s7 + $0x70] sm:$0xff] }
 0xbe8   :  { %5059 = vpow2.f32 %v1730_v6  ;;  %v3927_v6 = vld [vmem:[%s6270_s7 + $0x78] sm:$0xff] }
 0xbed   :  { %v5054_v7 = vpop.eup %5053 }
 0xbee   :  { %v5056_v8 = vpop.eup %5055  ;;  %v1732_v9 = vadd.f32 1.0, %v5054_v7  ;;  %v4779_v7 = vpack.c.bf16 %v3927_v6, %v3926_v1 }
 0xbef   :  { %v1733_v5 = vadd.f32 1.0, %v5056_v8  ;;  %v3950_v8 = vld [vmem:[%s6231_s8 + $0x70] sm:$0xff] }
 0xbf0   :  { %5061 = vrcp.f32 %v1732_v9  ;;  %v3951_v9 = vld [vmem:[%s6231_s8 + $0x78] sm:$0xff] }
 0xbf1   :  { %v5058_v3 = vpop.eup %5057  ;;  %5063 = vrcp.f32 %v1733_v5  ;;  %v4811_v5 = vpack.c.bf16 %v3951_v9, %v3950_v8 }
 0xbf2   :  { %v5060_v10 = vpop.eup %5059  ;;  %v1734_v11 = vadd.f32 1.0, %v5058_v3  ;;  %v3932_v3 = vld [vmem:[%s6271_s4 + $0x40] sm:$0xff] }
 0xbf3   :  { %v1735_v32 = vadd.f32 1.0, %v5060_v10  ;;  %v3933_v10 = vld [vmem:[%s6271_s4 + $0x48] sm:$0xff] }
 0xbf4   :  { %5065 = vrcp.f32 %v1734_v11  ;;  %v4783_v11 = vpack.c.bf16 %v3933_v10, %v3932_v3 }
 0xbf5   :  { %5067 = vrcp.f32 %v1735_v32 }
 0xbfa   :  { %v5062_v29 = vpop.eup %5061 }
 0xbfb   :  { %v5064_v12 = vpop.eup %5063  ;;  %v1744_v14 = vmul.f32 %v5062_v29, %v1706_v50  ;;  %v4799_v50 = vpack.c.bf16 %v3945_v49, %v3944_v48 }
 0xbfc   :  { %v1745_v13 = vmul.f32 %v5064_v12, %v1708_v52  ;;  %v3923_v52 = vld [vmem:[%s6270_s7 + $0x58] sm:$0xff] }
 0xbfd   :  { %4800 = vmatprep.subr.bf16.mxu0 %v4799_v50  ;;  %v4771_v53 = vpack.c.bf16 %v3923_v52, %v3922_v51  ;;  %v3941_v52 = vld [vmem:[%s6233_s10 + $0x1] ss:$0 sm:$0xff] }
 0xbfe   :  { %v5066_v16 = vpop.eup %5065  ;;  %1844 = vmatprep.mubr.f32.mxu0 %v1745_v13 }
 0xbff   :  { %v5068_v18 = vpop.eup %5067  ;;  %1845 = vmatmul.mubr.f32.vlgmr.msra.gmra.mrb[12].mxu0 %v1744_v14  ;;  %v1746_v22 = vmul.f32 %v5066_v16, %v1712_v57  ;;  %4772 = vmatprep.subr.bf16.mxu1 %v4771_v53  ;;  %v3924_v57 = vld [vmem:[%s6270_s7 + $0x60] sm:$0xff] }
 0xc00   :  { %v1747_v21 = vmul.f32 %v5068_v18, %v1714_v60  ;;  %4802 = vmatpush3.bf16.msra.mxu0 %v4799_v50  ;;  %4774 = vmatpush3.bf16.msra.mxu1 %v4771_v53  ;;  %v4775_v59 = vpack.c.bf16 %v3925_v58, %v3924_v57  ;;  %v3948_v60 = vld [vmem:[%s6231_s8 + $0x60] sm:$0xff] }
 0xc01   :  { %4804 = vmatprep.subr.bf16.mxu0 %v4803_v56  ;;  %v4807_v0 = vpack.c.bf16 %v3949_v61, %v3948_v60 }
 0xc02   :  { %1849 = vmatprep.mubr.f32.mxu0 %v1747_v21  ;;  %4776 = vmatprep.subr.bf16.mxu1 %v4775_v59  ;;  %v3918_v21 = vld [vmem:[%s6272_s1 + $0x1] ss:$0 sm:$0xff] }
 0xc03   :  { %1850 = vmatmul.mubr.f32.gmra.mrb[14].mxu0 %v1746_v22 }
 0xc04   :  { %4806 = vmatpush3.bf16.msra.mxu0 %v4803_v56  ;;  %4778 = vmatpush3.bf16.msra.mxu1 %v4775_v59 }
 0xc05   :  { %4808 = vmatprep.subr.bf16.mxu0 %v4807_v0  ;;  %4780 = vmatprep.subr.bf16.mxu1 %v4779_v7 }
 0xc08   :  { %4810 = vmatpush3.bf16.msra.mxu0 %v4807_v0  ;;  %4782 = vmatpush3.bf16.msra.mxu1 %v4779_v7 }
 0xc09   :  { %4812 = vmatprep.subr.bf16.mxu0 %v4811_v5  ;;  %4784 = vmatprep.subr.bf16.mxu1 %v4783_v11 }
 0xc0c   :  { %4814 = vmatpush3.bf16.msra.mxu0 %v4811_v5 }
 0xcd2   :  { %v4173_v23 = vpop.f32.mrb[12].mxu0 }
 0xcd3   :  { %v4174_v24 = vpop.f32.mrb[13].mxu0 }
 0xcd4   :  { %v4175_v25 = vadd.f32 %v4174_v24, %v4173_v23  ;;  %v3919_v23 = vld [vmem:[%s6273_s6 + $0x1] ss:$0 sm:$0xff] }
 0xcd6   :  { %v1855_v28 = vadd.f32 %v4175_v25, %v5562_v63  ;;  %v4176_v30 = vpop.f32.mrb[14].mxu0 }
 0xcd7   :  { %v4177_v31 = vpop.f32.mrb[15].mxu0 }
 0xcd8   :  { %v5741_v19 = vadd.f32 %v3915_v26, %v1855_v28  ;;  %v4178_v33 = vadd.f32 %v4177_v31, %v4176_v30  ;;  %v3934_v30 = vld [vmem:[%s6271_s4 + $0x50] sm:$0xff]  ;;  %v3935_v31 = vld [vmem:[%s6271_s4 + $0x58] sm:$0xff] }
 0xcda   :  { %v1856_v15 = vadd.f32 %v4178_v33, %v5560_v62  ;;  %v1870_v34 = vsel %vm85_vm0, %v5741_v19, 0.0 }
 0xcdb   :  { %1871 = vadd.xlane.f32.xlu0 %v1870_v34  ;;  %v4787_v34 = vpack.c.bf16 %v3935_v31, %v3934_v30 }
 0xcdc   :  { %v5746_v20 = vadd.f32 %v3915_v26, %v1856_v15 }
 0xcde   :  { %v1873_v35 = vsel %vm85_vm0, %v5746_v20, 0.0 }
 0xcdf   :  { %1874 = vadd.xlane.f32.xlu0 %v1873_v35  ;;  %v3936_v35 = vld [vmem:[%s6271_s4 + $0x60] sm:$0xff] }
 0xd68   :  { %v1872_v36 = vpop.xlane.xlu0 %1871 }
 0xd69   :  { %v1876_v37 = vmul.f32 0.015625, %v1872_v36  ;;  %v3937_v36 = vld [vmem:[%s6271_s4 + $0x68] sm:$0xff] }
 0xd6b   :  { %v5751_v63 = vsub.f32 %v5741_v19, %v1876_v37  ;;  %v4791_v37 = vpack.c.bf16 %v3937_v36, %v3936_v35 }
 0xd6c   :  { %v1875_v38 = vpop.xlane.xlu0 %1874 }
 0xd6d   :  { %v1877_v4 = vmul.f32 0.015625, %v1875_v38  ;;  %v1880_v62 = vmul.f32 %v5751_v63, %v5751_v63  ;;  %v3939_v38 = vld [vmem:[%s6271_s4 + $0x78] sm:$0xff] }
 0xd6f   :  { %v5756_v2 = vsub.f32 %v5746_v20, %v1877_v4  ;;  %v1882_v40 = vsel %vm85_vm0, %v1880_v62, 0.0  ;;  %v3953_v62 = vld [vmem:[%s6234_s11 + $0x1] ss:$0 sm:$0xff] }
 0xd70   :  { %1883 = vadd.xlane.f32.xlu0 %v1882_v40 }
 0xd71   :  { %v1881_v41 = vmul.f32 %v5756_v2, %v5756_v2 }
 0xd73   :  { %v1885_v42 = vsel %vm85_vm0, %v1881_v41, 0.0 }
 0xd74   :  { %1886 = vadd.xlane.f32.xlu1 %v1885_v42 }
 0xdfd   :  { %v1884_v32 = vpop.xlane.xlu0 %1883 }
 0xdfe   :  { %v1888_v29 = vmul.f32 0.015625, %v1884_v32 }
 0xe00   :  { %v1890_v12 = vadd.f32 1e-05, %v1888_v29 }
 0xe01   :  { %v1887_v13 = vpop.xlane.xlu1 %1886 }
 0xe02   :  { %5069 = vrsqrt.f32 %v1890_v12  ;;  %v1889_v14 = vmul.f32 0.015625, %v1887_v13  ;;  %v5900_v13 = vld [vmem:[%s6276_s25 + $0x8] sm:$0xff] }
 0xe04   :  { %v1891_v16 = vadd.f32 1e-05, %v1889_v14 }
 0xe06   :  { %5071 = vrsqrt.f32 %v1891_v16  ;;  %v5906_v16 = vld [vmem:[%s6276_s25] sm:$0xff]  ;;  %s6279_s25 = smov 80  }
 0xe0c   :  { %v5070_v18 = vpop.eup %5069 }
 0xe0d   :  { %v1894_v22 = vmul.f32 %v5070_v18, %v5751_v63  ;;  %v3938_v63 = vld [vmem:[%s6271_s4 + $0x70] sm:$0xff]  ;;  %s6278_s4 = smov 96  }
 0xe0e   :  { %v4795_v4 = vpack.c.bf16 %v3939_v38, %v3938_v63 }
 0xe0f   :  { %v1902_v24 = vmul.f32 %v3918_v21, %v1894_v22 }
 0xe10   :  { %v5072_v25 = vpop.eup %5071 }
 0xe11   :  { %v1895_v26 = vmul.f32 %v5072_v25, %v5756_v2  ;;  %v1910_v28 = vadd.f32 %v3919_v23, %v1902_v24  ;;  %v3929_v2 = vld [vmem:[%s6232_s9 + $0x1] ss:$0 sm:$0xff] }
 0xe13   :  { %v1903_v33 = vmul.f32 %v3918_v21, %v1895_v26  ;;  %4464 = vmatprep.mubr.msk.f32.mxu1 %vm85_vm0, %v1910_v28  ;;  %4502 = vmatprep.mubr.msk.f32.mxu0 %vm85_vm0, %v1910_v28 }
 0xe15   :  { %v1911_v15 = vadd.f32 %v3919_v23, %v1903_v33 }
 0xe17   :  { %4465 = vmatmul.mubr.msk.f32.vlgmr.msra.gmra.mrb[16].mxu1 %vm85_vm0, %v1911_v15  ;;  %4503 = vmatmul.mubr.msk.f32.vlgmr.msra.gmra.mrb[16].mxu0 %vm85_vm0, %v1911_v15 }
 0xe18   :  { %4786 = vmatpush3.bf16.msra.mxu1 %v4783_v11  ;;  %4483 = vmatprep.mubr.msk.f32.mxu1 %vm85_vm0, %v1910_v28 }
 0xe19   :  { %4788 = vmatprep.subr.bf16.mxu1 %v4787_v34 }
 0xe1c   :  { %4790 = vmatpush3.bf16.msra.mxu1 %v4787_v34 }
 0xe1d   :  { %4792 = vmatprep.subr.bf16.mxu1 %v4791_v37 }
 0xe20   :  { %4794 = vmatpush3.bf16.msra.mxu1 %v4791_v37 }
 0xe21   :  { %4796 = vmatprep.subr.bf16.mxu1 %v4795_v4 }
 0xe24   :  { %4798 = vmatpush3.bf16.msra.mxu1 %v4795_v4 }
 0xe27   :  { %4484 = vmatmul.mubr.msk.f32.vlgmr.msra.gmra.mrb[18].mxu1 %vm85_vm0, %v1911_v15 }
 0xeea   :  { %v4466_v40 = vpop.f32.mrb[16].mxu1  ;;  %v4504_v41 = vpop.f32.mrb[16].mxu0 }
 0xeeb   :  { %v2191_v42 = vadd.f32 %v4504_v41, %v3953_v62  ;;  %v2001_v43 = vpop.f32.mrb[17].mxu1  ;;  %v2185_v46 = vpop.f32.mrb[17].mxu0  ;;  %v5862_v51 = vadd.f32 %v4466_v40, %v3929_v2 }
 0xeec   :  { %v5854_v47 = vadd.f32 %v3929_v2, %v2001_v43  ;;  %v2186_v48 = vadd.f32 %v3953_v62, %v2185_v46 }
 0xeee   :  { %2397 = vrot.lane.b32.xlu1 %v5854_v47, %s5153_s2  ;;  %4509 = vmatprep.mubr.msk.f32.mxu1 %vm413_vm1, %v5854_v47  ;;  %v4821_v49 = vpack.c.bf16 %v2191_v42, %v2186_v48  ;;  %v5860_v50 = vpack.i.bf16 %v2191_v42, %v2186_v48 }
 0xef0   :  { %4822 = vmatprep.subr.bf16.mxu0 %v4821_v49 }
 0xef1   :  { %4824 = vmatpush3.bf16.msra.mxu0 %v4821_v49 }
 0xef2   :  { %2399 = vrot.lane.b32.xlu1 %v5862_v51, %s5153_s2 }
 0xefa   :  { %v4485_v53 = vpop.f32.mrb[18].mxu1 }
 0xefb   :  { %v2099_v54 = vadd.f32 %v4485_v53, %v3941_v52  ;;  %v2093_v55 = vpop.f32.mrb[19].mxu1 }
 0xefc   :  { %v2094_v56 = vadd.f32 %v3941_v52, %v2093_v55 }
 0xefe   :  { %v5869_v57 = vpack.i.bf16 %v2099_v54, %v2094_v56  ;;  %v4815_v58 = vpack.c.bf16 %v2099_v54, %v2094_v56 }
 0xf00   :  { %4984 = vrot.lane.b32.xlu0 %v5869_v57, %s5153_s2  ;;  %4817 = vmatprep.subr.msk.bf16.mxu1 %vm5408_vm2, %v4815_v58 }
 0xf01   :  { %4989 = vrot.lane.b32.xlu1 %v5869_v57, %s6278_s4  ;;  %4820 = vmatpush3.bf16.xpose.msk.msra.mxu1 %vm5408_vm2, %v4815_v58 }
 0xf04   :  { %2765 = vrot.lane.b32.xlu0 %v5854_v47, %s6278_s4 }
 0xf05   :  { %2767 = vrot.lane.b32.xlu1 %v5862_v51, %s6278_s4 }
 0xf08   :  { %4510 = vmatmul.mubr.msk.f32.vlgmr.msra.gmra.mrb[20].mxu1 %vm413_vm1, %v5862_v51 }
 0xf60   :  { %v2398_v59 = vpop.permute.xlu1 %2397 }
 0xf61   :  { %4523 = vmatprep.mubr.msk.f32.mxu1 %vm413_vm1, %v2398_v59 }
 0xf64   :  { %v2400_v60 = vpop.permute.xlu1 %2399 }
 0xf72   :  { %v4985_v61 = vpop.permute.xlu0 %4984 }
 0xf73   :  { %v4987_v0 = vunpack.i.h.bf16 %v4985_v61  ;;  %v4986_v1 = vunpack.i.l.bf16 %v4985_v61  ;;  %v4990_v6 = vpop.permute.xlu1 %4989 }
 0xf74   :  { %v4992_v7 = vunpack.i.h.bf16 %v4990_v6  ;;  %v4991_v8 = vunpack.i.l.bf16 %v4990_v6 }
 0xf75   :  { %v4825_v9 = vpack.c.bf16 %v4987_v0, %v4986_v1 }
 0xf76   :  { %v4843_v5 = vpack.c.bf16 %v4992_v7, %v4991_v8  ;;  %v2766_v3 = vpop.permute.xlu0 %2765 }
 0xf77   :  { %4827 = vmatprep.subr.msk.bf16.mxu1 %vm5408_vm2, %v4825_v9  ;;  %v2768_v10 = vpop.permute.xlu1 %2767 }
 0xf78   :  { %4830 = vmatpush3.bf16.xpose.msk.msra.mxu1 %vm5408_vm2, %v4825_v9 }
 0xf79   :  { %4845 = vmatprep.subr.msk.bf16.mxu1 %vm5408_vm2, %v4843_v5 }
 0xf7f   :  { %4524 = vmatmul.mubr.msk.f32.vlgmr.msra.gmra.mrb[22].mxu1 %vm413_vm1, %v2400_v60 }
 0xf80   :  { %4848 = vmatpush3.bf16.xpose.msk.msra.mxu1 %vm5408_vm2, %v4843_v5  ;;  %4551 = vmatprep.mubr.msk.f32.mxu1 %vm413_vm1, %v2766_v3 }
 0xf87   :  { %4552 = vmatmul.mubr.msk.f32.vlgmr.msra.gmra.mrb[24].mxu1 %vm413_vm1, %v2768_v10 }
 0xfdb   :  { %v4511_v11 = vpop.f32.mrb[20].mxu1 }
 0xfdc   :  { %v2291_v32 = vmul.f32 0.25, %v4511_v11  ;;  %v2281_v29 = vpop.f32.mrb[21].mxu1 }
 0xfdd   :  { %v2290_v12 = vmul.f32 0.25, %v2281_v29 }
 0xfde   :  { %v2293_v14 = vadd.f32 %v5900_v13, %v2291_v32 }
 0xfdf   :  { %v2292_v18 = vadd.f32 %v5906_v16, %v2290_v12 }
 0xfe0   :  { %v2297_v21 = vsel %vm413_vm1, %v2293_v14, -inf }
 0xfe1   :  { %2298 = vmax.xlane.f32.xlu1 %v2297_v21  ;;  %v2294_v22 = vsel %vm413_vm1, %v2292_v18, -inf }
 0xfe2   :  { %2295 = vmax.xlane.f32.xlu0 %v2294_v22 }
0x1052   :  { %v4525_v23 = vpop.f32.mrb[22].mxu1 }
0x1053   :  { %v2479_v24 = vpop.f32.mrb[23].mxu1  ;;  %v2489_v25 = vmul.f32 0.25, %v4525_v23 }
0x1054   :  { %v2488_v26 = vmul.f32 0.25, %v2479_v24 }
0x1055   :  { %v2491_v31 = vadd.f32 %v5900_v13, %v2489_v25 }
0x1056   :  { %v2490_v28 = vadd.f32 %v5906_v16, %v2488_v26 }
0x1057   :  { %v2495_v34 = vsel %vm413_vm1, %v2491_v31, -inf }
0x1058   :  { %v2492_v30 = vsel %vm413_vm1, %v2490_v28, -inf }
0x1059   :  { %2493 = vmax.xlane.f32.xlu0 %v2492_v30 }
0x105a   :  { %v4553_v33 = vpop.f32.mrb[24].mxu1 }
0x105b   :  { %v2847_v15 = vpop.f32.mrb[25].mxu1  ;;  %v2857_v8 = vmul.f32 0.25, %v4553_v33 }
0x105d   :  { %2496 = vmax.xlane.f32.xlu0 %v2495_v34 }
0x106e   :  { %v2299_v35 = vpop.xlane.xlu1 %2298 }
0x106f   :  { %v2301_v36 = vsub.f32 %v2293_v14, %v2299_v35  ;;  %v2296_v37 = vpop.xlane.xlu0 %2295 }
0x1070   :  { %v2300_v63 = vsub.f32 %v2292_v18, %v2296_v37 }
0x1071   :  { %v2304_v38 = vmul.f32 1.442695, %v2301_v36 }
0x1072   :  { %v2302_v4 = vmul.f32 1.442695, %v2300_v63  ;;  %v3958_v63 = vld [vmem:[%s6235_s12 + $0x50] sm:$0xff] }
0x1073   :  { %5073 = vpow2.f32 %v2304_v38  ;;  %v3959_v38 = vld [vmem:[%s6235_s12 + $0x58] sm:$0xff] }
0x1074   :  { %5075 = vpow2.f32 %v2302_v4  ;;  %v4835_v4 = vpack.c.bf16 %v3959_v38, %v3958_v63  ;;  %v3997_v38 = vld [vmem:[%s6236_s13 + $0x1] ss:$0 sm:$0xff] }
0x107d   :  { %v5074_v62 = vpop.eup %5073 }
0x107e   :  { %v5076_v2 = vpop.eup %5075  ;;  %v2309_v40 = vsel %vm413_vm1, %v5074_v62, 0.0 }
0x107f   :  { %2310 = vadd.xlane.f32.xlu1 %v2309_v40  ;;  %v2306_v41 = vsel %vm413_vm1, %v5076_v2, 0.0 }
0x1080   :  { %2307 = vadd.xlane.f32.xlu0 %v2306_v41 }
0x10e6   :  { %v2494_v42 = vpop.xlane.xlu0 %2493 }
0x10e7   :  { %v2498_v43 = vsub.f32 %v2490_v28, %v2494_v42 }
0x10e9   :  { %v2500_v46 = vmul.f32 1.442695, %v2498_v43 }
0x10ea   :  { %v2497_v48 = vpop.xlane.xlu0 %2496 }
0x10eb   :  { %5077 = vpow2.f32 %v2500_v46  ;;  %v2499_v49 = vsub.f32 %v2491_v31, %v2497_v48 }
0x10ed   :  { %v2502_v52 = vmul.f32 1.442695, %v2499_v49 }
0x10ef   :  { %5079 = vpow2.f32 %v2502_v52 }
0x10f5   :  { %v5078_v53 = vpop.eup %5077 }
0x10f6   :  { %v2504_v54 = vsel %vm413_vm1, %v5078_v53, 0.0 }
0x10f7   :  { %2505 = vadd.xlane.f32.xlu0 %v2504_v54 }
0x10f9   :  { %v5080_v55 = vpop.eup %5079 }
0x10fa   :  { %v2507_v56 = vsel %vm413_vm1, %v5080_v55, 0.0 }
0x10fb   :  { %2508 = vadd.xlane.f32.xlu1 %v2507_v56 }
0x110c   :  { %v2311_v58 = vpop.xlane.xlu1 %2310  ;;  %4999 = vrot.lane.b32.xlu1 %v5869_v57, %s6279_s25  ;;  %v2856_v57 = vmul.f32 0.25, %v2847_v15 }
0x110d   :  { %5081 = vrcp.f32 %v2311_v58  ;;  %4994 = vrot.lane.b32.xlu0 %v5860_v50, %s5153_s2  ;;  %v2308_v59 = vpop.xlane.xlu0 %2307 }
0x110e   :  { %5083 = vrcp.f32 %v2308_v59  ;;  %v2858_v6 = vadd.f32 %v5906_v16, %v2856_v57 }
0x1110   :  { %3052 = vrot.lane.b32.xlu1 %v5854_v47, %s6279_s25  ;;  %v2860_v7 = vsel %vm413_vm1, %v2858_v6, -inf  ;;  %v2859_v47 = vadd.f32 %v5900_v13, %v2857_v8 }
0x1112   :  { %v2863_v9 = vsel %vm413_vm1, %v2859_v47, -inf }
0x1114   :  { %3054 = vrot.lane.b32.xlu1 %v5862_v51, %s6279_s25 }
0x1117   :  { %v5082_v60 = vpop.eup %5081 }
0x1118   :  { %v5084_v61 = vpop.eup %5083  ;;  %v2315_v1 = vmul.f32 %v5082_v60, %v5074_v62  ;;  %v3956_v62 = vld [vmem:[%s6235_s12 + $0x40] sm:$0xff] }
0x1119   :  { %v2313_v0 = vmul.f32 %v5084_v61, %v5076_v2  ;;  %v3957_v2 = vld [vmem:[%s6235_s12 + $0x48] sm:$0xff] }
0x111a   :  { %v4839_v40 = vpack.c.bf16 %v3957_v2, %v3956_v62 }
0x111b   :  { %4516 = vmatprep.mubr.msk.f32.mxu0 %vm413_vm1, %v2313_v0 }
0x111c   :  { %4517 = vmatmul.mubr.msk.f32.vlgmr.msra.gmra.mrb[18].mxu0 %vm413_vm1, %v2315_v1 }
0x112c   :  { %2861 = vmax.xlane.f32.xlu0 %v2860_v7 }
0x1138   :  { %2864 = vmax.xlane.f32.xlu1 %v2863_v9 }
0x1184   :  { %v2506_v51 = vpop.xlane.xlu0 %2505 }
0x1185   :  { %5085 = vrcp.f32 %v2506_v51 }
0x1188   :  { %v2509_v5 = vpop.xlane.xlu1 %2508  ;;  %v4995_v3 = vpop.permute.xlu0 %4994 }
0x1189   :  { %5087 = vrcp.f32 %v2509_v5  ;;  %v4997_v10 = vunpack.i.h.bf16 %v4995_v3  ;;  %v4996_v11 = vunpack.i.l.bf16 %v4995_v3 }
0x118b   :  { %v4831_v32 = vpack.c.bf16 %v4997_v10, %v4996_v11 }
0x118c   :  { %v5000_v29 = vpop.permute.xlu1 %4999 }
0x118d   :  { %v5002_v12 = vunpack.i.h.bf16 %v5000_v29  ;;  %v5001_v14 = vunpack.i.l.bf16 %v5000_v29  ;;  %4832 = vmatprep.subr.bf16.mxu0 %v4831_v32 }
0x118e   :  { %4834 = vmatpush3.bf16.msra.mxu0 %v4831_v32 }
0x118f   :  { %v5086_v18 = vpop.eup %5085  ;;  %v4857_v21 = vpack.c.bf16 %v5002_v12, %v5001_v14  ;;  %4836 = vmatprep.subr.bf16.mxu0 %v4835_v4 }
0x1190   :  { %v3053_v22 = vpop.permute.xlu1 %3052  ;;  %v2511_v23 = vmul.f32 %v5086_v18, %v5078_v53 }
0x1191   :  { %4859 = vmatprep.subr.msk.bf16.mxu1 %vm5408_vm2, %v4857_v21  ;;  %4572 = vmatprep.mubr.msk.f32.mxu1 %vm413_vm1, %v3053_v22 }
0x1192   :  { %4530 = vmatprep.mubr.msk.f32.mxu0 %vm413_vm1, %v2511_v23  ;;  %4862 = vmatpush3.bf16.xpose.msk.msra.mxu1 %vm5408_vm2, %v4857_v21 }
0x1193   :  { %v5088_v24 = vpop.eup %5087 }
0x1194   :  { %v2513_v25 = vmul.f32 %v5088_v24, %v5080_v55  ;;  %v3055_v26 = vpop.permute.xlu1 %3054 }
0x1196   :  { %4531 = vmatmul.mubr.msk.f32.vlgmr.msra.gmra.mrb[20].mxu0 %vm413_vm1, %v2513_v25 }
0x1197   :  { %4838 = vmatpush3.bf16.msra.mxu0 %v4835_v4 }
0x1198   :  { %4840 = vmatprep.subr.bf16.mxu0 %v4839_v40 }
0x1199   :  { %4573 = vmatmul.mubr.msk.f32.vlgmr.msra.gmra.mrb[26].mxu1 %vm413_vm1, %v3055_v26  ;;  %v3962_v26 = vld [vmem:[%s6235_s12 + $0x70] sm:$0xff] }
0x119a   :  { %3497 = vmatprep.mubr.f32.mxu1 %v5156_v39 }
0x11b9   :  { %v2862_v28 = vpop.xlane.xlu0 %2861 }
0x11ba   :  { %v2866_v30 = vsub.f32 %v2858_v6, %v2862_v28  ;;  %v3963_v28 = vld [vmem:[%s6235_s12 + $0x78] sm:$0xff] }
0x11bc   :  { %v2868_v15 = vmul.f32 1.442695, %v2866_v30 }
0x11c5   :  { %v2865_v31 = vpop.xlane.xlu1 %2864 }
0x11c6   :  { %v2867_v33 = vsub.f32 %v2859_v47, %v2865_v31 }
0x11c8   :  { %v2870_v34 = vmul.f32 1.442695, %v2867_v33  ;;  %v4867_v33 = vpack.c.bf16 %v3963_v28, %v3962_v26 }
0x11ca   :  { %5089 = vpow2.f32 %v2870_v34 }
0x11cb   :  { %5091 = vpow2.f32 %v2868_v15 }
0x11d4   :  { %v5090_v35 = vpop.eup %5089 }
0x11d5   :  { %v2875_v17 = vsel %vm413_vm1, %v5090_v35, 0.0  ;;  %v5092_v36 = vpop.eup %5091 }
0x11d6   :  { %2876 = vadd.xlane.f32.xlu0 %v2875_v17  ;;  %v2872_v37 = vsel %vm413_vm1, %v5092_v36, 0.0 }
0x11da   :  { %2873 = vadd.xlane.f32.xlu0 %v2872_v37 }
0x11ef   :  { %v4518_v41 = vpop.f32.mrb[18].mxu0 }
0x11f0   :  { %v2388_v42 = vpop.f32.mrb[19].mxu0  ;;  %5004 = vrot.lane.b32.xlu0 %v5860_v50, %s6278_s4 }
0x1263   :  { %v2877_v43 = vpop.xlane.xlu0 %2876 }
0x1267   :  { %v2874_v46 = vpop.xlane.xlu0 %2873 }
0x1268   :  { %5093 = vrcp.f32 %v2874_v46 }
0x1269   :  { %5095 = vrcp.f32 %v2877_v43  ;;  %v4532_v48 = vpop.f32.mrb[20].mxu0 }
0x126a   :  { %v2594_v49 = vpop.f32.mrb[21].mxu0 }
0x126b   :  { %v5005_v52 = vpop.permute.xlu0 %5004  ;;  %4537 = vmatprep.mubr.msk.f32.mxu0 %vm413_vm1, %v2594_v49 }
0x126c   :  { %v5007_v53 = vunpack.i.h.bf16 %v5005_v52  ;;  %v5006_v54 = vunpack.i.l.bf16 %v5005_v52  ;;  %4538 = vmatmul.mubr.msk.f32.vlgmr.msra.gmra.mrb[22].mxu0 %vm413_vm1, %v4532_v48  ;;  %v4574_v55 = vpop.f32.mrb[26].mxu1 }
0x126d   :  { %4544 = vmatprep.mubr.msk.f32.mxu0 %vm413_vm1, %v2388_v42  ;;  %v3134_v56 = vpop.f32.mrb[27].mxu1  ;;  %4842 = vmatpush3.bf16.msra.mxu0 %v4839_v40  ;;  %v3144_v59 = vmul.f32 0.25, %v4574_v55 }
0x126e   :  { %v4849_v58 = vpack.c.bf16 %v5007_v53, %v5006_v54  ;;  %v3143_v60 = vmul.f32 0.25, %v3134_v56 }
0x126f   :  { %v3146_v57 = vadd.f32 %v5900_v13, %v3144_v59  ;;  %v3961_v13 = vld [vmem:[%s6235_s12 + $0x68] sm:$0xff]  ;;  %v4005_v59 = vld [vmem:[%s6239_s16 + $0x98] sm:$0xff] }
0x1270   :  { %4850 = vmatprep.subr.bf16.mxu0 %v4849_v58  ;;  %v3145_v61 = vadd.f32 %v5906_v16, %v3143_v60  ;;  %v3960_v16 = vld [vmem:[%s6235_s12 + $0x60] sm:$0xff] }
0x1271   :  { %v3150_v47 = vsel %vm413_vm1, %v3146_v57, -inf  ;;  %v4853_v9 = vpack.c.bf16 %v3961_v13, %v3960_v16  ;;  %v4011_v13 = vld [vmem:[%s6239_s16 + $0xc8] sm:$0xff] }
0x1272   :  { %v5094_v0 = vpop.eup %5093  ;;  %v3147_v1 = vsel %vm413_vm1, %v3145_v61, -inf }
0x1273   :  { %v5096_v6 = vpop.eup %5095  ;;  %3148 = vmax.xlane.f32.xlu1 %v3147_v1  ;;  %v2879_v7 = vmul.f32 %v5094_v0, %v5092_v36  ;;  %v4004_v0 = vld [vmem:[%s6239_s16 + $0x90] sm:$0xff] }
0x1274   :  { %4545 = vmatmul.mubr.msk.f32.vlgmr.msra.gmra.mrb[22].mxu0 %vm413_vm1, %v4518_v41  ;;  %v2881_v8 = vmul.f32 %v5096_v6, %v5090_v35  ;;  %v4009_v6 = vld [vmem:[%s6239_s16 + $0xb8] sm:$0xff] }
0x1275   :  { %4852 = vmatpush3.bf16.msra.mxu0 %v4849_v58  ;;  %4558 = vmatprep.mubr.msk.f32.mxu0 %vm413_vm1, %v2879_v7  ;;  %v4003_v58 = vld [vmem:[%s6239_s16 + $0x88] sm:$0xff] }
0x1276   :  { %4854 = vmatprep.subr.bf16.mxu0 %v4853_v9  ;;  %v4871_v60 = vpack.c.bf16 %v4005_v59, %v4003_v58  ;;  %v4047_v58 = vld [vmem:[%s6241_s18 + $0x1b0] sm:$0xff]  ;;  %v4048_v59 = vld [vmem:[%s6241_s18 + $0x1b8] sm:$0xff] }
0x1277   :  { %3151 = vmax.xlane.f32.xlu1 %v3150_v47  ;;  %v4008_v47 = vld [vmem:[%s6239_s16 + $0xb0] sm:$0xff] }
0x1278   :  { %4559 = vmatmul.mubr.msk.f32.vlgmr.msra.gmra.mrb[24].mxu0 %vm413_vm1, %v2881_v8  ;;  %4872 = vmatprep.subr.bf16.mxu1 %v4871_v60  ;;  %v4006_v8 = vld [vmem:[%s6239_s16 + $0xa0] sm:$0xff]  ;;  %v4899_v60 = vpack.c.bf16 %v4048_v59, %v4047_v58 }
0x1279   :  { %4856 = vmatpush3.bf16.msra.mxu0 %v4853_v9  ;;  %v4877_v16 = vpack.c.bf16 %v4008_v47, %v4006_v8  ;;  %v4013_v9 = vld [vmem:[%s6239_s16 + $0xd8] sm:$0xff]  ;;  %v4033_v8 = vld [vmem:[%s6241_s18 + $0x140] sm:$0xff]  ;;  %v4034_v47 = vld [vmem:[%s6241_s18 + $0x148] sm:$0xff] }
0x1300   :  { %v3149_v51 = vpop.xlane.xlu1 %3148 }
0x1301   :  { %v3153_v5 = vsub.f32 %v3145_v61, %v3149_v51  ;;  %v4002_v61 = vld [vmem:[%s6239_s16 + $0x80] sm:$0xff]  ;;  %v4879_v51 = vpack.c.bf16 %v4013_v9, %v4011_v13  ;;  %v4051_v13 = vld [vmem:[%s6241_s18 + $0x1d0] sm:$0xff]  ;;  %v4052_v9 = vld [vmem:[%s6241_s18 + $0x1d8] sm:$0xff] }
0x1302   :  { %v4873_v1 = vpack.c.bf16 %v4004_v0, %v4002_v61  ;;  %v4031_v61 = vld [vmem:[%s6241_s18 + $0x130] sm:$0xff]  ;;  %v4032_v0 = vld [vmem:[%s6241_s18 + $0x138] sm:$0xff] }
0x1303   :  { %v3155_v11 = vmul.f32 1.442695, %v3153_v5  ;;  %v4010_v5 = vld [vmem:[%s6239_s16 + $0xc0] sm:$0xff] }
0x1304   :  { %v3152_v3 = vpop.xlane.xlu1 %3151  ;;  %4874 = vmatpush1.bf16.msra.mxu1 %v4873_v1  ;;  %v4901_v1 = vpack.c.bf16 %v4032_v0, %v4031_v61  ;;  %v5157_v0 = vmov 0.0|0.0  }
0x1305   :  { %v3154_v10 = vsub.f32 %v3146_v57, %v3152_v3  ;;  %v4007_v57 = vld [vmem:[%s6239_s16 + $0xa8] sm:$0xff]  ;;  %v4012_v3 = vld [vmem:[%s6239_s16 + $0xd0] sm:$0xff] }
0x1306   :  { %v4875_v7 = vpack.c.bf16 %v4009_v6, %v4007_v57  ;;  %v4049_v57 = vld [vmem:[%s6241_s18 + $0x1c0] sm:$0xff]  ;;  %v4050_v6 = vld [vmem:[%s6241_s18 + $0x1c8] sm:$0xff] }
0x1307   :  { %v3157_v32 = vmul.f32 1.442695, %v3154_v10  ;;  %v4881_v10 = vpack.c.bf16 %v4012_v3, %v4010_v5  ;;  %v4035_v5 = vld [vmem:[%s6241_s18 + $0x150] sm:$0xff]  ;;  %v4036_v3 = vld [vmem:[%s6241_s18 + $0x158] sm:$0xff] }
0x1308   :  { %4876 = vmatprep.subr.bf16.mxu1 %v4875_v7  ;;  %v4903_v7 = vpack.c.bf16 %v4050_v6, %v4049_v57 }
0x1309   :  { %5097 = vpow2.f32 %v3157_v32  ;;  %4878 = vmatpush1.bf16.msra.mxu1 %v4877_v16  ;;  %v4017_v32 = vld [vmem:[%s6239_s16 + $0xf8] sm:$0xff]  ;;  %v4905_v16 = vpack.c.bf16 %v4034_v47, %v4033_v8 }
0x130a   :  { %5099 = vpow2.f32 %v3155_v11  ;;  %4880 = vmatprep.subr.bf16.mxu1 %v4879_v51  ;;  %v4015_v11 = vld [vmem:[%s6239_s16 + $0xe8] sm:$0xff]  ;;  %v4907_v51 = vpack.c.bf16 %v4052_v9, %v4051_v13  ;;  %v4058_v13 = vld [vmem:[%s6242_s19 + $0x1] ss:$0 sm:$0xff] }
0x130d   :  { %4882 = vmatpush1.bf16.msra.mxu1 %v4881_v10  ;;  %v4909_v10 = vpack.c.bf16 %v4036_v3, %v4035_v5 }
0x1313   :  { %v5098_v29 = vpop.eup %5097 }
0x1314   :  { %v3162_v12 = vsel %vm413_vm1, %v5098_v29, 0.0  ;;  %v5100_v14 = vpop.eup %5099 }
0x1315   :  { %3163 = vadd.xlane.f32.xlu1 %v3162_v12  ;;  %v3159_v18 = vsel %vm413_vm1, %v5100_v14, 0.0  ;;  %v4883_v12 = vpack.c.bf16 %v4017_v32, %v4015_v11  ;;  %v4053_v11 = vld [vmem:[%s6241_s18 + $0x1e0] sm:$0xff]  ;;  %v4054_v32 = vld [vmem:[%s6241_s18 + $0x1e8] sm:$0xff] }
0x1317   :  { %4884 = vmatprep.subr.bf16.mxu1 %v4883_v12  ;;  %v4037_v12 = vld [vmem:[%s6241_s18 + $0x160] sm:$0xff] }
0x1319   :  { %3160 = vadd.xlane.f32.xlu1 %v3159_v18 }
0x132a   :  { %5009 = vrot.lane.b32.xlu1 %v5860_v50, %s6279_s25 }
0x134b   :  { %v4560_v21 = vpop.f32.mrb[24].mxu0 }
0x134c   :  { %v2960_v22 = vpop.f32.mrb[25].mxu0 }
0x134d   :  { %4565 = vmatprep.mubr.msk.f32.mxu0 %vm413_vm1, %v2960_v22 }
0x134e   :  { %4566 = vmatmul.mubr.msk.f32.vlgmr.msra.gmra.mrb[22].mxu0 %vm413_vm1, %v4560_v21 }
0x13a2   :  { %v3164_v23 = vpop.xlane.xlu1 %3163 }
0x13a3   :  { %5101 = vrcp.f32 %v3164_v23 }
0x13a6   :  { %v3161_v24 = vpop.xlane.xlu1 %3160 }
0x13a7   :  { %5103 = vrcp.f32 %v3161_v24 }
0x13aa   :  { %v5010_v25 = vpop.permute.xlu1 %5009 }
0x13ab   :  { %v5012_v50 = vunpack.i.h.bf16 %v5010_v25  ;;  %v5011_v30 = vunpack.i.l.bf16 %v5010_v25 }
0x13ad   :  { %v4863_v31 = vpack.c.bf16 %v5012_v50, %v5011_v30  ;;  %v5102_v15 = vpop.eup %5101  ;;  %v4000_v50 = vld [vmem:[%s6237_s14 + $0x1] ss:$0 sm:$0xff] }
0x13ae   :  { %v3168_v17 = vmul.f32 %v5102_v15, %v5098_v29  ;;  %v4014_v29 = vld [vmem:[%s6239_s16 + $0xe0] sm:$0xff] }
0x13af   :  { %4864 = vmatprep.subr.bf16.mxu0 %v4863_v31 }
0x13b0   :  { %4866 = vmatpush3.bf16.msra.mxu0 %v4863_v31  ;;  %v4001_v31 = vld [vmem:[%s6238_s15 + $0x1] ss:$0 sm:$0xff] }
0x13b1   :  { %v5104_v34 = vpop.eup %5103  ;;  %4868 = vmatprep.subr.bf16.mxu0 %v4867_v33 }
0x13b2   :  { %v3166_v35 = vmul.f32 %v5104_v34, %v5100_v14  ;;  %v4016_v14 = vld [vmem:[%s6239_s16 + $0xf0] sm:$0xff] }
0x13b3   :  { %v4885_v18 = vpack.c.bf16 %v4016_v14, %v4014_v29  ;;  %v4911_v29 = vpack.c.bf16 %v4054_v32, %v4053_v11  ;;  %v4038_v14 = vld [vmem:[%s6241_s18 + $0x168] sm:$0xff] }
0x13b4   :  { %4579 = vmatprep.mubr.msk.f32.mxu0 %vm413_vm1, %v3166_v35 }
0x13b5   :  { %4580 = vmatmul.mubr.msk.f32.vlgmr.msra.gmra.mrb[26].mxu0 %vm413_vm1, %v3168_v17  ;;  %4886 = vmatpush1.bf16.msra.mxu1 %v4885_v18  ;;  %v4913_v18 = vpack.c.bf16 %v4038_v14, %v4037_v12 }
0x13b6   :  { %4870 = vmatpush3.bf16.msra.mxu0 %v4867_v33  ;;  %4919 = vmatprep.subr.bf16.mxu1 %v5157_v0 }
0x1488   :  { %v4581_v36 = vpop.f32.mrb[26].mxu0 }
0x1489   :  { %v3247_v37 = vpop.f32.mrb[27].mxu0 }
0x148a   :  { %4586 = vmatprep.mubr.msk.f32.mxu0 %vm413_vm1, %v3247_v37  ;;  %v4041_v37 = vld [vmem:[%s6241_s18 + $0x180] sm:$0xff] }
0x148b   :  { %4587 = vmatmul.mubr.msk.f32.vlgmr.msra.gmra.mrb[22].mxu0 %vm413_vm1, %v4581_v36 }
0x155e   :  { %v4588_v63 = vpop.f32.mrb[22].mxu0 }
0x155f   :  { %v3340_v4 = vadd.f32 %v4588_v63, %v5746_v20  ;;  %v3328_v62 = vpop.f32.mrb[23].mxu0  ;;  %v4042_v63 = vld [vmem:[%s6241_s18 + $0x188] sm:$0xff] }
0x1560   :  { %v3339_v2 = vadd.f32 %v3328_v62, %v5741_v19  ;;  %v4026_v62 = vld [vmem:[%s6241_s18 + $0x108] sm:$0xff] }
0x1561   :  { %v5995_v40 = vadd.f32 %v3997_v38, %v3340_v4  ;;  %v4025_v4 = vld [vmem:[%s6241_s18 + $0x100] sm:$0xff] }
0x1562   :  { %v5997_v41 = vadd.f32 %v3997_v38, %v3339_v2  ;;  %v4887_v38 = vpack.c.bf16 %v4042_v63, %v4041_v37  ;;  %v4889_v2 = vpack.c.bf16 %v4026_v62, %v4025_v4 }
0x1563   :  { %v3358_v42 = vsel %vm85_vm0, %v5995_v40, 0.0 }
0x1564   :  { %3359 = vadd.xlane.f32.xlu1 %v3358_v42  ;;  %v3355_v43 = vsel %vm85_vm0, %v5997_v41, 0.0  ;;  %4888 = vmatprep.subr.bf16.mxu0 %v4887_v38  ;;  %v4043_v42 = vld [vmem:[%s6241_s18 + $0x190] sm:$0xff] }
0x1565   :  { %3356 = vadd.xlane.f32.xlu0 %v3355_v43  ;;  %4890 = vmatpush3.bf16.msra.mxu0 %v4889_v2  ;;  %v4044_v43 = vld [vmem:[%s6241_s18 + $0x198] sm:$0xff] }
0x15f1   :  { %v3360_v46 = vpop.xlane.xlu1 %3359 }
0x15f2   :  { %v3362_v48 = vmul.f32 0.015625, %v3360_v46  ;;  %v3357_v49 = vpop.xlane.xlu0 %3356  ;;  %v4891_v46 = vpack.c.bf16 %v4044_v43, %v4043_v42 }
0x15f3   :  { %v3361_v52 = vmul.f32 0.015625, %v3357_v49  ;;  %v4028_v49 = vld [vmem:[%s6241_s18 + $0x118] sm:$0xff] }
0x15f4   :  { %v3364_v20 = vsub.f32 %v5995_v40, %v3362_v48  ;;  %v4027_v48 = vld [vmem:[%s6241_s18 + $0x110] sm:$0xff]  ;;  %4892 = vmatprep.subr.bf16.mxu0 %v4891_v46 }
0x15f5   :  { %v3363_v19 = vsub.f32 %v5997_v41, %v3361_v52  ;;  %v4893_v52 = vpack.c.bf16 %v4028_v49, %v4027_v48 }
0x15f6   :  { %v3366_v55 = vmul.f32 %v3364_v20, %v3364_v20 }
0x15f7   :  { %v3365_v53 = vmul.f32 %v3363_v19, %v3363_v19  ;;  %4894 = vmatpush3.bf16.msra.mxu0 %v4893_v52 }
0x15f8   :  { %v3370_v56 = vsel %vm85_vm0, %v3366_v55, 0.0  ;;  %v4030_v55 = vld [vmem:[%s6241_s18 + $0x128] sm:$0xff] }
0x15f9   :  { %v3367_v54 = vsel %vm85_vm0, %v3365_v53, 0.0 }
0x15fa   :  { %3368 = vadd.xlane.f32.xlu0 %v3367_v54  ;;  %v4029_v54 = vld [vmem:[%s6241_s18 + $0x120] sm:$0xff] }
0x15fe   :  { %3371 = vadd.xlane.f32.xlu0 %v3370_v56  ;;  %v4897_v56 = vpack.c.bf16 %v4030_v55, %v4029_v54 }
0x1687   :  { %v3369_v21 = vpop.xlane.xlu0 %3368 }
0x1688   :  { %v3373_v22 = vmul.f32 0.015625, %v3369_v21  ;;  %v4055_v21 = vld [vmem:[%s6241_s18 + $0x1f0] sm:$0xff] }
0x168a   :  { %v3375_v23 = vadd.f32 1e-05, %v3373_v22  ;;  %v4056_v22 = vld [vmem:[%s6241_s18 + $0x1f8] sm:$0xff] }
0x168b   :  { %v3372_v24 = vpop.xlane.xlu0 %3371 }
0x168c   :  { %5105 = vrsqrt.f32 %v3375_v23  ;;  %v3374_v25 = vmul.f32 0.015625, %v3372_v24  ;;  %v4915_v23 = vpack.c.bf16 %v4056_v22, %v4055_v21  ;;  %v4039_v24 = vld [vmem:[%s6241_s18 + $0x170] sm:$0xff]  ;;  %v3766_v21 = vld [vmem:[%s6245_s22] sm:$0xff]  ;;  %v3767_v22 = vld [vmem:[%s6245_s22 + $0x8] sm:$0xff] }
0x168e   :  { %v3376_v26 = vadd.f32 1e-05, %v3374_v25  ;;  %v4040_v25 = vld [vmem:[%s6241_s18 + $0x178] sm:$0xff] }
0x1690   :  { %5107 = vrsqrt.f32 %v3376_v26  ;;  %v4917_v26 = vpack.c.bf16 %v4040_v25, %v4039_v24  ;;  %v3769_v24 = vld [vmem:[%s6245_s22 + $0x18] sm:$0xff] }
0x1696   :  { %v5106_v28 = vpop.eup %5105 }
0x1697   :  { %v3379_v30 = vmul.f32 %v5106_v28, %v3363_v19  ;;  %v4046_v19 = vld [vmem:[%s6241_s18 + $0x1a8] sm:$0xff]  ;;  %v4018_v28 = vld [vmem:[%s6277_s30 + $0x2] sm:$0x3] }
0x1699   :  { %v3387_v33 = vmul.f32 %v4000_v50, %v3379_v30  ;;  %v3424_v30 = vrot.slane %v4018_v28, %v1629_v27 }
0x169a   :  { %v5108_v15 = vpop.eup %5107 }
0x169b   :  { %v3395_v34 = vadd.f32 %v4001_v31, %v3387_v33  ;;  %v3380_v35 = vmul.f32 %v5108_v15, %v3364_v20  ;;  %v4045_v20 = vld [vmem:[%s6241_s18 + $0x1a0] sm:$0xff] }
0x169c   :  { %v4895_v53 = vpack.c.bf16 %v4046_v19, %v4045_v20 }
0x169d   :  { %4019 = vmatmul.mubr.msk.f32.vlgmr.msra.gmra.mrb[28].mxu1 %vm85_vm0, %v3395_v34  ;;  %v3388_v17 = vmul.f32 %v4000_v50, %v3380_v35  ;;  %v3420_v50 = vrot.slane %v4018_v28, %v1625_v45  ;;  %v3771_v28 = vld [vmem:[%s6245_s22 + $0x28] sm:$0xff] }
0x169e   :  { %3503 = vmatprep.mubr.f32.mxu1 %v5156_v39  ;;  %4896 = vmatprep.subr.bf16.mxu0 %v4895_v53 }
0x169f   :  { %v3396_v36 = vadd.f32 %v4001_v31, %v3388_v17  ;;  %4898 = vmatpush3.bf16.msra.mxu0 %v4897_v56 }
0x16a0   :  { %4900 = vmatprep.subr.bf16.mxu0 %v4899_v60 }
0x16a1   :  { %4020 = vmatmul.mubr.msk.f32.gmra.mrb[30].mxu1 %vm85_vm0, %v3396_v36 }
0x16a2   :  { %4593 = vmatprep.mubr.msk.f32.mxu1 %vm5158_vm3, %v5156_v39 }
0x16a3   :  { %4902 = vmatpush3.bf16.msra.mxu0 %v4901_v1 }
0x16a4   :  { %4904 = vmatprep.subr.bf16.mxu0 %v4903_v7 }
0x16a7   :  { %4906 = vmatpush3.bf16.msra.mxu0 %v4905_v16 }
0x16a8   :  { %4908 = vmatprep.subr.bf16.mxu0 %v4907_v51 }
0x16ab   :  { %4910 = vmatpush3.bf16.msra.mxu0 %v4909_v10  ;;  %v3662_v10 = vld [vmem:[%s6280_s29] sm:$0x3] }
0x16ac   :  { %4912 = vmatprep.subr.bf16.mxu0 %v4911_v29 }
0x16af   :  { %4914 = vmatpush3.bf16.msra.mxu0 %v4913_v18 }
0x16b0   :  { %4916 = vmatprep.subr.bf16.mxu0 %v4915_v23  ;;  %v3768_v23 = vld [vmem:[%s6245_s22 + $0x10] sm:$0xff] }
0x16b1   :  { %v4926_v25 = vpack.c.bf16 %v3769_v24, %v3768_v23 }
0x16b3   :  { %4918 = vmatpush3.bf16.msra.mxu0 %v4917_v26  ;;  %v3770_v26 = vld [vmem:[%s6245_s22 + $0x20] sm:$0xff] }
0x1770   :  { %v3499_v31 = vpop.f32.mrb[28].mxu1 }
0x1771   :  { %v3500_v33 = vadd.f32 %v3499_v31, %v3420_v50  ;;  %v3501_v15 = vpop.f32.mrb[29].mxu1  ;;  %v3773_v31 = vld [vmem:[%s6245_s22 + $0x38] sm:$0xff] }
0x1772   :  { %v3502_v34 = vadd.f32 %v3501_v15, %v3424_v30 }
0x1773   :  { %v4021_v35 = vmul.f32 -1.702, %v3500_v33 }
0x1774   :  { %v4022_v17 = vmul.f32 -1.702, %v3502_v34  ;;  %v3505_v36 = vpop.f32.mrb[30].mxu1 }
0x1775   :  { %v3518_v37 = vmul.f32 1.442695, %v4021_v35  ;;  %v3506_v63 = vadd.f32 %v3505_v36, %v3420_v50  ;;  %v3507_v38 = vpop.f32.mrb[31].mxu1  ;;  %v4929_v50 = vpack.c.bf16 %v3771_v28, %v3770_v26  ;;  %v4060_v36 = vld [vmem:[%s6243_s20] ss:$0 sm:$0xff] }
0x1776   :  { %v3520_v4 = vmul.f32 1.442695, %v4022_v17  ;;  %v3508_v62 = vadd.f32 %v3507_v38, %v3424_v30  ;;  %v3772_v30 = vld [vmem:[%s6245_s22 + $0x30] sm:$0xff]  ;;  %s5159_s22 = smov [#allocation2]  }
0x1777   :  { %5109 = vpow2.f32 %v3518_v37  ;;  %v4023_v2 = vmul.f32 -1.702, %v3506_v63  ;;  %s3855_s8 = sshll.u32 %s5159_s22, 4  ;;  %s3856_s8 = int_to_ptr.vmem [resolvable:$true] %s3855_s8 }
0x1778   :  { %5111 = vpow2.f32 %v3520_v4  ;;  %v4024_v42 = vmul.f32 -1.702, %v3508_v62  ;;  %s5129_s5 = scalar_lea.vmem %s3856_s8, 32  ;;  %p5134_p1 = scmp.lt.s32.totalorder %s3856_s8, %s3856_s8 }
0x1779   :  { %v3522_v45 = vmul.f32 1.442695, %v4023_v2  ;;  %p5130_p0 = scmp.ne.s32.totalorder %s3856_s8, %s5129_s5  ;;  %p5135_p2 = scmp.lt.s32.totalorder %s5129_s5, %s5129_s5 }
0x177a   :  { %v3524_v43 = vmul.f32 1.442695, %v4024_v42 }
0x177b   :  { %5113 = vpow2.f32 %v3522_v45  ;;  %p5136_p3 = por %p5135_p2, %p5134_p1 }
0x177c   :  { %5115 = vpow2.f32 %v3524_v43 }
0x177d   :  { %p5137_p4 = pnand %p5136_p3, %p5130_p0 }
0x1781   :  { %v5110_v44 = vpop.eup %5109 }
0x1782   :  { %v5112_v27 = vpop.eup %5111  ;;  %v3526_v46 = vadd.f32 1.0, %v5110_v44 }
0x1783   :  { %v3527_v48 = vadd.f32 1.0, %v5112_v27 }
0x1784   :  { %5117 = vrcp.f32 %v3526_v46 }
0x1785   :  { %v5114_v49 = vpop.eup %5113  ;;  %5119 = vrcp.f32 %v3527_v48 }
0x1786   :  { %v5116_v52 = vpop.eup %5115  ;;  %v3528_v20 = vadd.f32 1.0, %v5114_v49 }
0x1787   :  { %v3529_v19 = vadd.f32 1.0, %v5116_v52 }
0x1788   :  { %5121 = vrcp.f32 %v3528_v20 }
0x1789   :  { %5123 = vrcp.f32 %v3529_v19 }
0x178e   :  { %v5118_v53 = vpop.eup %5117 }
0x178f   :  { %v5120_v54 = vpop.eup %5119  ;;  %v3538_v56 = vmul.f32 %v5118_v53, %v3500_v33  ;;  %v4932_v33 = vpack.c.bf16 %v3773_v31, %v3772_v30 }
0x1790   :  { %v3539_v55 = vmul.f32 %v5120_v54, %v3502_v34 }
0x1792   :  { %v5122_v58 = vpop.eup %5121  ;;  %3639 = vmatprep.mubr.f32.mxu0 %v3539_v55 }
0x1793   :  { %v5124_v59 = vpop.eup %5123  ;;  %3640 = vmatmul.mubr.f32.vlgmr.msra.gmra.mrb[28].mxu0 %v3538_v56  ;;  %v3540_v61 = vmul.f32 %v5122_v58, %v3506_v63  ;;  %v4061_v63 = vld [vmem:[%s6244_s21] ss:$0 sm:$0xff] }
0x1794   :  { %v3541_v60 = vmul.f32 %v5124_v59, %v3508_v62 }
0x1796   :  { %3644 = vmatprep.mubr.f32.mxu0 %v3541_v60 }
0x1797   :  { %3645 = vmatmul.mubr.f32.gmra.mrb[30].mxu0 %v3540_v61 }
0x1866   :  { %v4289_v1 = vpop.f32.mrb[28].mxu0 }
0x1867   :  { %v4290_v57 = vpop.f32.mrb[29].mxu0 }
0x1868   :  { %v4291_v6 = vadd.f32 %v4290_v57, %v4289_v1 }
0x186a   :  { %v4292_v7 = vpop.f32.mrb[30].mxu0  ;;  %v3650_v47 = vadd.f32 %v4291_v6, %v5997_v41 }
0x186b   :  { %v4293_v8 = vpop.f32.mrb[31].mxu0 }
0x186c   :  { %v4294_v16 = vadd.f32 %v4293_v8, %v4292_v7  ;;  %v3660_v51 = vadd.f32 %v4058_v13, %v3650_v47 }
0x186e   :  { %v3651_v9 = vadd.f32 %v4294_v16, %v5995_v40 }
0x1870   :  { %v3661_v5 = vadd.f32 %v4058_v13, %v3651_v9 }
0x1872   :  { %v4920_v3 = vpack.c.bf16 %v3661_v5, %v3660_v51 }
0x1874   :  { %4921 = vmatpush3.bf16.msra.mxu1 %v4920_v3 }
0x1875   :  { %4922 = vmatprep.subr.bf16.mxu1 %v5157_v0 }
0x1877   :  { %4594 = vmatmul.mubr.msk.f32.vlgmr.msra.gmra.mrb[32].mxu1 %vm413_vm1, %v3662_v10 }
0x1878   :  { %4612 = vmatprep.mubr.msk.f32.mxu1 %vm5158_vm3, %v5156_v39  ;;  %v4923_v39 = vpack.c.bf16 %v3767_v22, %v3766_v21 }
0x187a   :  { %4924 = vmatpush3.bf16.msra.mxu1 %v4923_v39 }
0x187b   :  { %4925 = vmatprep.subr.bf16.mxu1 %v5157_v0 }
0x187e   :  { %4927 = vmatpush3.bf16.msra.mxu1 %v4926_v25 }
0x187f   :  { %4928 = vmatprep.subr.bf16.mxu1 %v5157_v0 }
0x1882   :  { %4930 = vmatpush3.bf16.msra.mxu1 %v4929_v50 }
0x1883   :  { %4931 = vmatprep.subr.bf16.mxu1 %v5157_v0 }
0x1886   :  { %4933 = vmatpush3.bf16.msra.mxu1 %v4932_v33 }
0x194a   :  { %v3732_v41 = vpop.f32.mrb[32].mxu1 }
0x194b   :  { %v3739_v11 = vsel %vm3738_vm4, %v3732_v41, 0.0  ;;  %v4595_v32 = vpop.f32.mrb[33].mxu1 }
0x194c   :  { %3740 = vadd.xlane.f32.xlu0 %v3739_v11 }
0x19d9   :  { %v3741_v40 = vpop.xlane.xlu0 %3740 }
0x19da   :  { %v3742_v29 = vmul.f32 0.015625, %v3741_v40 }
0x19dc   :  { %v3743_v12 = vsub.f32 %v3732_v41, %v3742_v29 }
0x19de   :  { %v3744_v14 = vmul.f32 %v3743_v12, %v3743_v12 }
0x19e0   :  { %v3745_v18 = vsel %vm3738_vm4, %v3744_v14, 0.0 }
0x19e1   :  { %3746 = vadd.xlane.f32.xlu0 %v3745_v18 }
0x1a6e   :  { %v3747_v15 = vpop.xlane.xlu0 %3746 }
0x1a6f   :  { %v3748_v34 = vmul.f32 0.015625, %v3747_v15 }
0x1a71   :  { %v3749_v35 = vadd.f32 1e-05, %v3748_v34 }
0x1a73   :  { %5125 = vrsqrt.f32 %v3749_v35 }
0x1a7d   :  { %v5126_v17 = vpop.eup %5125 }
0x1a7e   :  { %v3751_v37 = vmul.f32 %v5126_v17, %v3743_v12 }
0x1a80   :  { %v3758_v38 = vmul.f32 %v4060_v36, %v3751_v37 }
0x1a82   :  { %v3765_v4 = vadd.f32 %v4061_v63, %v3758_v38 }
0x1a84   :  { %4613 = vmatmul.mubr.msk.f32.vlgmr.msra.gmra.mrb[34].mxu1 %vm85_vm0, %v3765_v4 }
0x1b57   :  { %v3843_v62 = vpop.f32.mrb[34].mxu1 }
0x1b58   :  { %3848 = vst.msk [vmem:[#allocation2] sm:$0x3] %vm3847_vm5, %v3843_v62  ;;  %v4614_v2 = vpop.f32.mrb[35].mxu1 }
0x1b59   :  { %5140 = shalt.err (!%p5137_p4)
}
0x1b5a   :  { %s5141_s18 = scalar_lea.hbm %s6246_s23, 32 }
0x1b5b   :  { %p5142_p5 = scmp.ne.s32.totalorder %s6246_s23, %s5141_s18  ;;  %p5145_p6 = scmp.lt.u32.totalorder %s5141_s18, %s6246_s23 }
0x1b5d   :  { %p5147_p7 = pnand %p5145_p6, %p5142_p5 }
0x1b5f   :  { %5150 = shalt.err (!%p5147_p7)
}
0x1b60   :  { %3858 = dma.vmem_to_hbm [thread:$0]  %s3856_s8, 32, %s6246_s23, [#allocation3]  }
0x1b61   :  { %5151 = dma.done.wait [#allocation3], 32  }
0x1b62   :  { %5152 = vsyncadd [#allocation3], 4294967264 }
0x1b63   :  { %3862 = vsyncpa [#allocation3], 1 }

</bundles_post_ra>
